<compile_context>
chip_gen: v7x
topology: tpu7x:2x2x1
jax: 0.10.0
libtpu: 0.0.40
codegen_flags: <defaults>
</compile_context>

<pallas_src>
import functools
import numpy as np
import jax
import jax.numpy as jnp
from jax.experimental import pallas as pl
from jax.experimental.pallas import tpu as pltpu


# ----------------------------- configuration -------------------------------
BSZ = 2          # batch size
COND_NUM = 2     # number of conditioning views
IN_CH = 9        # plucker image channels
H = W = 16       # plucker image spatial size
PATCH = 4        # patch_size (kernel == stride)
GAMBA_DIM = 32   # opt.gamba_dim == transformer_dim
N_NEURONS = 128  # MLP hidden width (fixed in GSDecoder)
MLP_DIM = 128    # GSDecoder mlp_dim
GS_NUM = 64      # gaussians (tokens) per batch element fed to the decoder
POS_BOUND = 0.4
N_COORDS = 21
INIT_DENSITY = 0.1

LANE = 128                        # lane-padded head / output width
OUT_DIM = 3 + 1 + 3 + 4 + 3       # 14

# output / repacked-head lane layout
OP_COL = 3                        # opacity
SC_LO, SC_HI = 4, 7               # scale
ROT_COL = 7                       # quaternion w (constant 1.0)
RGB_LO, RGB_HI = 11, 14           # rgb
XYZ_LO = 64                       # 63 xyz logit columns at 64..126

# coords buffer: linspace(-0.4, 0.4, 21) repeated for the 3 axes
COORDS_NP = np.tile(np.linspace(-POS_BOUND, POS_BOUND, N_COORDS,
                                dtype=np.float32)[None, :], (3, 1))


# ----------------------------- in-kernel helpers ----------------------------
def _sigmoid(x):
    return 1.0 / (1.0 + jnp.exp(-x))


def _softplus(x):
    # numerically stable softplus with only exp/log (safe Mosaic lowering)
    return jnp.maximum(x, 0.0) + jnp.log(1.0 + jnp.exp(-jnp.abs(x)))


# ----------------------------- fused Pallas kernel ---------------------------
def _gamba_fused_kernel(p_ref, sw_ref, sb_ref,
                        f_ref, w1_ref, b1_ref, w2_ref, b2_ref,
                        wh_ref, bh_ref, whc_ref, bhc_ref, msel_ref,
                        out_ref, *, m1, m2):
    """Single-step fused kernel: stem patch-embed conv + GSDecoder."""
    f32 = jnp.float32

    # (1) stem_layer conv as (M1, C*p*p) @ (C*p*p, 128) matmul + bias.
    # bf16 operands, f32 accumulation (native MXU pass).
    stem = jnp.dot(p_ref[...], sw_ref[...], preferred_element_type=f32) + sb_ref[...]

    # (2) GSDecoder MLP: Linear -> SiLU -> Linear -> SiLU (output activation)
    h = jnp.dot(f_ref[...], w1_ref[...], preferred_element_type=f32) + b1_ref[...]
    h = h * _sigmoid(h)
    hb = h.astype(jnp.bfloat16)
    h = jnp.dot(hb, w2_ref[...], preferred_element_type=f32) + b2_ref[...]
    h = h * _sigmoid(h)
    hb = h.astype(jnp.bfloat16)

    # Packed heads (pre-activations already at their output lanes) and the
    # folded coords matmul. Both depend only on hb -> they issue back-to-back
    # on the MXU instead of forming a serialized ho -> s chain.
    ho = jnp.dot(hb, wh_ref[...], preferred_element_type=f32) + bh_ref[...]
    s = jnp.dot(hb, whc_ref[...], preferred_element_type=f32) + bhc_ref[...]

    # xyz head: per-axis F.normalize over 21-wide groups then dot with coords,
    # recast as block-diagonal matmuls (MXU) + rsqrt (EUP).  Only columns 0..2
    # of s / nsq are nonzero; all other columns give 0 * finite = 0.
    ho2 = (ho * ho).astype(jnp.bfloat16)
    nsq = jnp.dot(ho2, msel_ref[...], preferred_element_type=f32)
    xyz = s * jax.lax.rsqrt(jnp.maximum(nsq, 1e-24))

    # Full-width activations, selected per lane below -> no narrow slices and
    # a single lane-dense store (no masked vst.msk read-modify-writes).
    sig = _sigmoid(ho)                 # opacity (lane 3) and rgb (lanes 11:14)
    sp = 0.1 * _softplus(ho)           # scale (lanes 4:7)

    col = jax.lax.broadcasted_iota(jnp.int32, (m2, LANE), 1)
    gs = jnp.where(col < 3, xyz,
         jnp.where((col == OP_COL) | ((col >= RGB_LO) & (col < RGB_HI)), sig,
         jnp.where((col >= SC_LO) & (col < SC_HI), sp,
         jnp.where(col == ROT_COL, jnp.float32(1.0), jnp.float32(0.0)))))

    # Two lane-dense, sublane-aligned stores into the single padded output.
    out_ref[0:m1, :] = stem
    out_ref[m1:m1 + m2, :] = gs


def gamba_fused_pallas(patches, feats2d, params):
    """One grid-free pallas_call: whole problem (<1 MiB) lives in VMEM."""
    m1 = patches.shape[0]
    m2 = feats2d.shape[0]
    assert m1 % 8 == 0 and m2 % 8 == 0, "row blocks must be sublane-aligned"
    vmem = pl.BlockSpec(memory_space=pltpu.MemorySpace.VMEM)
    out_pad = pl.pallas_call(
        functools.partial(_gamba_fused_kernel, m1=m1, m2=m2),
        out_shape=jax.ShapeDtypeStruct((m1 + m2, LANE), jnp.float32),
        in_specs=[vmem] * 13,
        out_specs=vmem,
    )(patches.astype(jnp.bfloat16), params["stem_w_bf"], params["stem_b_pad"],
      feats2d.astype(jnp.bfloat16), params["w1_bf"], params["b1r"],
      params["w2_bf"], params["b2r"],
      params["wh_pad_bf"], params["bh_pad"],
      params["whc_bf"], params["bhc"], params["msel_bf"])
    # slice the lane / row padding off in the wrapper (cheap XLA slices)
    return out_pad[:m1, :GAMBA_DIM], out_pad[m1:, :OUT_DIM]


# ----------------------------- glue / wrappers ------------------------------
def patchify_nchw(x, p):
    """NCHW -> (N*Hp*Wp, C*p*p), patch order = row-major over (Hp, Wp)."""
    N, C, Hh, Ww = x.shape
    Hp, Wp = Hh // p, Ww // p
    x = x.reshape(N, C, Hp, p, Wp, p).transpose(0, 2, 4, 1, 3, 5)
    return x.reshape(N * Hp * Wp, C * p * p), (N, Hp, Wp)


def plucker_cond_rearrange(embed_rows, dims, bsz, gamba_dim):
    """Reproduce GSPredictor's 4-scan-order concatenation of the stem output."""
    N, Hp, Wp = dims
    pc = embed_rows.reshape(N, Hp, Wp, gamba_dim).transpose(0, 3, 1, 2)  # NCHW
    p1 = pc.reshape(N, gamba_dim, Hp * Wp)
    p2 = pc.transpose(0, 1, 3, 2).reshape(N, gamba_dim, Hp * Wp)
    p3 = jnp.flip(pc, axis=3).reshape(N, gamba_dim, Hp * Wp)
    p4 = jnp.flip(pc.transpose(0, 1, 3, 2), axis=3).reshape(N, gamba_dim, Hp * Wp)
    cond = jnp.concatenate([p1, p2, p3, p4], axis=-1)
    return cond.transpose(0, 2, 1).reshape(bsz, -1, gamba_dim)


# ----------------------------- parameter init -------------------------------
def xavier_uniform(key, fan_in, fan_out):
    limit = float(np.sqrt(6.0 / (fan_in + fan_out)))
    return jax.random.uniform(key, (fan_in, fan_out), jnp.float32, -limit, limit)


def init_params(key):
    ks = jax.random.split(key, 8)
    params = {}

    # stem conv: Conv2d(9, gamba_dim, k=stride=PATCH)
    fan_in = IN_CH * PATCH * PATCH
    bound = 1.0 / np.sqrt(fan_in)
    w_conv = jax.random.uniform(ks[0], (GAMBA_DIM, IN_CH, PATCH, PATCH),
                                jnp.float32, -bound, bound)
    b_conv = jax.random.uniform(ks[1], (GAMBA_DIM,), jnp.float32, -bound, bound)
    params["stem_w"] = w_conv
    params["stem_b"] = b_conv
    w_flat = w_conv.reshape(GAMBA_DIM, -1).T                      # (C*p*p, O)
    stem_w_pad = jnp.zeros((fan_in, LANE), jnp.float32).at[:, :GAMBA_DIM].set(w_flat)
    params["stem_w_bf"] = stem_w_pad.astype(jnp.bfloat16)
    params["stem_b_pad"] = jnp.zeros((1, LANE), jnp.float32
                                     ).at[0, :GAMBA_DIM].set(b_conv)

    # decoder MLP: Linear(GAMBA_DIM,128) -> SiLU -> Linear(128,128) -> SiLU
    params["w1"] = xavier_uniform(ks[2], GAMBA_DIM, N_NEURONS)
    params["b1"] = jnp.zeros((N_NEURONS,), jnp.float32)
    params["w2"] = xavier_uniform(ks[3], N_NEURONS, MLP_DIM)
    params["b2"] = jnp.zeros((MLP_DIM,), jnp.float32)
    params["w1_bf"] = params["w1"].astype(jnp.bfloat16)
    params["w2_bf"] = params["w2"].astype(jnp.bfloat16)
    params["b1r"] = params["b1"].reshape(1, -1)
    params["b2r"] = params["b2"].reshape(1, -1)

    # gs heads (reference packing for the pure-JAX check):
    #   [xyz(63) | opacity(1) | scale(3) | rgb(3)]
    w_xyz = xavier_uniform(ks[4], MLP_DIM, 3 * N_COORDS)          # xavier, bias 0
    b_xyz = jnp.zeros((3 * N_COORDS,), jnp.float32)
    w_op = xavier_uniform(ks[5], MLP_DIM, 1)
    b_op = jnp.full((1,), float(np.log(INIT_DENSITY / (1 - INIT_DENSITY))),
                    jnp.float32)                                  # inverse_sigmoid(0.1)
    w_sc = xavier_uniform(ks[6], MLP_DIM, 3)
    b_sc = jnp.full((3,), -1.8, jnp.float32)
    w_rgb = jnp.zeros((MLP_DIM, 3), jnp.float32)                  # init constant 0
    b_rgb = jnp.zeros((3,), jnp.float32)
    params["wh"] = jnp.concatenate([w_xyz, w_op, w_sc, w_rgb], axis=1)   # (128, 70)
    params["bh"] = jnp.concatenate([b_xyz, b_op, b_sc, b_rgb], axis=0)   # (70,)

    # Lane-repacked head: pre-activations land directly at their OUTPUT lanes
    # (opacity lane 3, scale 4:7, rgb 11:14), xyz logits moved to lanes 64:127.
    wh_pad = jnp.zeros((MLP_DIM, LANE), jnp.float32)
    wh_pad = wh_pad.at[:, OP_COL:OP_COL + 1].set(w_op)
    wh_pad = wh_pad.at[:, SC_LO:SC_HI].set(w_sc)
    wh_pad = wh_pad.at[:, RGB_LO:RGB_HI].set(w_rgb)
    wh_pad = wh_pad.at[:, XYZ_LO:XYZ_LO + 3 * N_COORDS].set(w_xyz)
    bh_pad = jnp.zeros((1, LANE), jnp.float32)
    bh_pad = bh_pad.at[0, OP_COL].set(b_op[0])
    bh_pad = bh_pad.at[0, SC_LO:SC_HI].set(b_sc)
    bh_pad = bh_pad.at[0, RGB_LO:RGB_HI].set(b_rgb)
    bh_pad = bh_pad.at[0, XYZ_LO:XYZ_LO + 3 * N_COORDS].set(b_xyz)
    params["wh_pad_bf"] = wh_pad.astype(jnp.bfloat16)
    params["bh_pad"] = bh_pad

    # Block-diagonal coords / mask matrices on the repacked xyz lanes; the
    # coords matmul is folded onto h (whc = wh_pad @ cmat) so s only depends
    # on h in the kernel.  Passed as kernel inputs (never closed over).
    cmat = np.zeros((LANE, LANE), np.float32)
    msel = np.zeros((LANE, LANE), np.float32)
    for a in range(3):
        r0 = XYZ_LO + a * N_COORDS
        cmat[r0:r0 + N_COORDS, a] = COORDS_NP[a]
        msel[r0:r0 + N_COORDS, a] = 1.0
    cmat = jnp.asarray(cmat)
    msel = jnp.asarray(msel)
    params["whc_bf"] = (wh_pad @ cmat).astype(jnp.bfloat16)
    params["bhc"] = bh_pad @ cmat
    params["msel_bf"] = msel.astype(jnp.bfloat16)
    return params


# ----------------------------- pure-JAX references --------------------------
def decoder_ref(feats, params):
    coords = jnp.asarray(COORDS_NP)
    h = jax.nn.silu(feats @ params["w1"] + params["b1"])
    h = jax.nn.silu(h @ params["w2"] + params["b2"])
    ho = h @ params["wh"] + params["bh"]
    v = ho[..., :63].reshape(*ho.shape[:-1], 3, N_COORDS)
    nrm = jnp.sqrt(jnp.sum(v * v, axis=-1, keepdims=True))
    prob = v / jnp.maximum(nrm, 1e-12)                            # F.normalize
    xyz = jnp.sum(prob * coords[None, None], axis=-1)
    opacity = jax.nn.sigmoid(ho[..., 63:64])
    scale = 0.1 * jax.nn.softplus(ho[..., 64:67])
    rgb = jax.nn.sigmoid(ho[..., 67:70])
    rot = jnp.concatenate(
        [jnp.ones((*ho.shape[:-1], 1), jnp.float32),
         jnp.zeros((*ho.shape[:-1], 3), jnp.float32)], axis=-1)
    return jnp.concatenate([xyz, opacity, scale, rot, rgb], axis=-1)


def stem_conv_ref(x_nchw, params):
    out = jax.lax.conv_general_dilated(
        x_nchw, params["stem_w"], window_strides=(PATCH, PATCH),
        padding="VALID", dimension_numbers=("NCHW", "OIHW", "NCHW"))
    return out + params["stem_b"].reshape(1, -1, 1, 1)


# ----------------------------- forward --------------------------------------
def gamba_forward(plucker_img, feats, params):
    """plucker_img: (B, V, 9, H, W) NCHW; feats: (B, gs_num, gamba_dim)."""
    bsz, cond_num = plucker_img.shape[:2]
    x = plucker_img.reshape(bsz * cond_num, IN_CH, H, W)

    # (1) stem_layer conv (patchify glue) + (2) GSDecoder — one fused pallas_call
    patches, dims = patchify_nchw(x, PATCH)
    M = feats.shape[0] * feats.shape[1]
    embed_rows, gs2d = gamba_fused_pallas(patches,
                                          feats.reshape(M, GAMBA_DIM), params)

    plucker_cond = plucker_cond_rearrange(embed_rows, dims, bsz, GAMBA_DIM)
    # TODO(synk): plucker_cond would feed GambaFormer, which is not provided.

    pred_gs = gs2d.reshape(feats.shape[0], feats.shape[1], OUT_DIM)
    return {"pred_gs": pred_gs, "plucker_cond": plucker_cond,
            "embed_rows": embed_rows}


# ----------------------------- main ------------------------------------------
if __name__ == "__main__":
    key = jax.random.PRNGKey(0)
    kp, kx, kf = jax.random.split(key, 3)
    params = init_params(kp)

    plucker_img = jax.random.normal(kx, (BSZ, COND_NUM, IN_CH, H, W), jnp.float32)
    # synthetic transformer output features (GambaFormer not provided)
    feats = jax.random.normal(kf, (BSZ, GS_NUM, GAMBA_DIM), jnp.float32)

    fwd = jax.jit(gamba_forward)
    out = fwd(plucker_img, feats, params)
    jax.block_until_ready(out)

    # Correctness checks against pure-JAX f32 references.  Tolerances account
    # for the bf16-operand / f32-accumulate MXU path used inside the kernel.
    ref_gs = decoder_ref(feats, params)
    np.testing.assert_allclose(np.asarray(out["pred_gs"]), np.asarray(ref_gs),
                               rtol=2e-2, atol=2e-2)

    ref_conv = stem_conv_ref(plucker_img.reshape(-1, IN_CH, H, W), params)
    N, Hp, Wp = BSZ * COND_NUM, H // PATCH, W // PATCH
    got_conv = np.asarray(out["embed_rows"]).reshape(N, Hp, Wp, GAMBA_DIM)
    got_conv = got_conv.transpose(0, 3, 1, 2)
    np.testing.assert_allclose(got_conv, np.asarray(ref_conv),
                               rtol=2e-2, atol=2e-2)

    print("KERNEL_OK")
</pallas_src>

<mosaic_0001>
module attributes {stable_mosaic.version = 11 : i64} {
  func.func @_gamba_fused_kernel(%arg0: memref<64x144xbf16, #tpu.memory_space<vmem>>, %arg1: memref<144x128xbf16, #tpu.memory_space<vmem>>, %arg2: memref<1x128xf32, #tpu.memory_space<vmem>>, %arg3: memref<128x32xbf16, #tpu.memory_space<vmem>>, %arg4: memref<32x128xbf16, #tpu.memory_space<vmem>>, %arg5: memref<1x128xf32, #tpu.memory_space<vmem>>, %arg6: memref<128x128xbf16, #tpu.memory_space<vmem>>, %arg7: memref<1x128xf32, #tpu.memory_space<vmem>>, %arg8: memref<128x128xbf16, #tpu.memory_space<vmem>>, %arg9: memref<1x128xf32, #tpu.memory_space<vmem>>, %arg10: memref<128x128xbf16, #tpu.memory_space<vmem>>, %arg11: memref<1x128xf32, #tpu.memory_space<vmem>>, %arg12: memref<128x128xbf16, #tpu.memory_space<vmem>>, %arg13: memref<192x128xf32, #tpu.memory_space<vmem>>) attributes {dimension_semantics = [], scalar_prefetch = 0 : i64, scratch_operands = 0 : i64, tpu.core_type = #tpu.core_type<tc>} {
    %c0 = arith.constant 0 : index
    %c0_0 = arith.constant 0 : index
    %0 = vector.load %arg0[%c0, %c0_0] : memref<64x144xbf16, #tpu.memory_space<vmem>>, vector<64x144xbf16>
    %c0_1 = arith.constant 0 : index
    %c0_2 = arith.constant 0 : index
    %1 = vector.load %arg1[%c0_1, %c0_2] : memref<144x128xbf16, #tpu.memory_space<vmem>>, vector<144x128xbf16>
    %cst = arith.constant dense<0.000000e+00> : vector<64x128xf32>
    %2 = tpu.matmul %0, %1, %cst {dimension_numbers = #tpu.dot_dimension_numbers<[1], [0], [0], [1], [0, 0, 1, 1], [], []>} : vector<64x144xbf16>, vector<144x128xbf16>, vector<64x128xf32> -> vector<64x128xf32>
    %c0_3 = arith.constant 0 : index
    %c0_4 = arith.constant 0 : index
    %3 = vector.load %arg2[%c0_3, %c0_4] : memref<1x128xf32, #tpu.memory_space<vmem>>, vector<1x128xf32>
    %4 = vector.broadcast %3 : vector<1x128xf32> to vector<64x128xf32>
    %5 = arith.addf %2, %4 : vector<64x128xf32>
    %c0_5 = arith.constant 0 : index
    %c0_6 = arith.constant 0 : index
    %6 = vector.load %arg3[%c0_5, %c0_6] : memref<128x32xbf16, #tpu.memory_space<vmem>>, vector<128x32xbf16>
    %c0_7 = arith.constant 0 : index
    %c0_8 = arith.constant 0 : index
    %7 = vector.load %arg4[%c0_7, %c0_8] : memref<32x128xbf16, #tpu.memory_space<vmem>>, vector<32x128xbf16>
    %cst_9 = arith.constant dense<0.000000e+00> : vector<128x128xf32>
    %8 = tpu.matmul %6, %7, %cst_9 {dimension_numbers = #tpu.dot_dimension_numbers<[1], [0], [0], [1], [0, 0, 1, 1], [], []>} : vector<128x32xbf16>, vector<32x128xbf16>, vector<128x128xf32> -> vector<128x128xf32>
    %c0_10 = arith.constant 0 : index
    %c0_11 = arith.constant 0 : index
    %9 = vector.load %arg5[%c0_10, %c0_11] : memref<1x128xf32, #tpu.memory_space<vmem>>, vector<1x128xf32>
    %10 = vector.broadcast %9 : vector<1x128xf32> to vector<128x128xf32>
    %11 = arith.addf %8, %10 : vector<128x128xf32>
    %cst_12 = arith.constant 0.000000e+00 : f32
    %12 = vector.broadcast %cst_12 : f32 to vector<128x128xf32>
    %13 = arith.subf %12, %11 : vector<128x128xf32>
    %14 = math.exp %13 : vector<128x128xf32>
    %cst_13 = arith.constant 1.000000e+00 : f32
    %15 = vector.broadcast %cst_13 : f32 to vector<128x128xf32>
    %16 = arith.addf %15, %14 : vector<128x128xf32>
    %cst_14 = arith.constant 1.000000e+00 : f32
    %17 = vector.broadcast %cst_14 : f32 to vector<128x128xf32>
    %18 = arith.divf %17, %16 : vector<128x128xf32>
    %19 = arith.mulf %11, %18 : vector<128x128xf32>
    %20 = arith.truncf %19 : vector<128x128xf32> to vector<128x128xbf16>
    %c0_15 = arith.constant 0 : index
    %c0_16 = arith.constant 0 : index
    %21 = vector.load %arg6[%c0_15, %c0_16] : memref<128x128xbf16, #tpu.memory_space<vmem>>, vector<128x128xbf16>
    %cst_17 = arith.constant dense<0.000000e+00> : vector<128x128xf32>
    %22 = tpu.matmul %20, %21, %cst_17 {dimension_numbers = #tpu.dot_dimension_numbers<[1], [0], [0], [1], [0, 0, 1, 1], [], []>} : vector<128x128xbf16>, vector<128x128xbf16>, vector<128x128xf32> -> vector<128x128xf32>
    %c0_18 = arith.constant 0 : index
    %c0_19 = arith.constant 0 : index
    %23 = vector.load %arg7[%c0_18, %c0_19] : memref<1x128xf32, #tpu.memory_space<vmem>>, vector<1x128xf32>
    %24 = vector.broadcast %23 : vector<1x128xf32> to vector<128x128xf32>
    %25 = arith.addf %22, %24 : vector<128x128xf32>
    %cst_20 = arith.constant 0.000000e+00 : f32
    %26 = vector.broadcast %cst_20 : f32 to vector<128x128xf32>
    %27 = arith.subf %26, %25 : vector<128x128xf32>
    %28 = math.exp %27 : vector<128x128xf32>
    %cst_21 = arith.constant 1.000000e+00 : f32
    %29 = vector.broadcast %cst_21 : f32 to vector<128x128xf32>
    %30 = arith.addf %29, %28 : vector<128x128xf32>
    %cst_22 = arith.constant 1.000000e+00 : f32
    %31 = vector.broadcast %cst_22 : f32 to vector<128x128xf32>
    %32 = arith.divf %31, %30 : vector<128x128xf32>
    %33 = arith.mulf %25, %32 : vector<128x128xf32>
    %34 = arith.truncf %33 : vector<128x128xf32> to vector<128x128xbf16>
    %c0_23 = arith.constant 0 : index
    %c0_24 = arith.constant 0 : index
    %35 = vector.load %arg8[%c0_23, %c0_24] : memref<128x128xbf16, #tpu.memory_space<vmem>>, vector<128x128xbf16>
    %cst_25 = arith.constant dense<0.000000e+00> : vector<128x128xf32>
    %36 = tpu.matmul %34, %35, %cst_25 {dimension_numbers = #tpu.dot_dimension_numbers<[1], [0], [0], [1], [0, 0, 1, 1], [], []>} : vector<128x128xbf16>, vector<128x128xbf16>, vector<128x128xf32> -> vector<128x128xf32>
    %c0_26 = arith.constant 0 : index
    %c0_27 = arith.constant 0 : index
    %37 = vector.load %arg9[%c0_26, %c0_27] : memref<1x128xf32, #tpu.memory_space<vmem>>, vector<1x128xf32>
    %38 = vector.broadcast %37 : vector<1x128xf32> to vector<128x128xf32>
    %39 = arith.addf %36, %38 : vector<128x128xf32>
    %c0_28 = arith.constant 0 : index
    %c0_29 = arith.constant 0 : index
    %40 = vector.load %arg10[%c0_28, %c0_29] : memref<128x128xbf16, #tpu.memory_space<vmem>>, vector<128x128xbf16>
    %cst_30 = arith.constant dense<0.000000e+00> : vector<128x128xf32>
    %41 = tpu.matmul %34, %40, %cst_30 {dimension_numbers = #tpu.dot_dimension_numbers<[1], [0], [0], [1], [0, 0, 1, 1], [], []>} : vector<128x128xbf16>, vector<128x128xbf16>, vector<128x128xf32> -> vector<128x128xf32>
    %c0_31 = arith.constant 0 : index
    %c0_32 = arith.constant 0 : index
    %42 = vector.load %arg11[%c0_31, %c0_32] : memref<1x128xf32, #tpu.memory_space<vmem>>, vector<1x128xf32>
    %43 = vector.broadcast %42 : vector<1x128xf32> to vector<128x128xf32>
    %44 = arith.addf %41, %43 : vector<128x128xf32>
    %45 = arith.mulf %39, %39 : vector<128x128xf32>
    %46 = arith.truncf %45 : vector<128x128xf32> to vector<128x128xbf16>
    %c0_33 = arith.constant 0 : index
    %c0_34 = arith.constant 0 : index
    %47 = vector.load %arg12[%c0_33, %c0_34] : memref<128x128xbf16, #tpu.memory_space<vmem>>, vector<128x128xbf16>
    %cst_35 = arith.constant dense<0.000000e+00> : vector<128x128xf32>
    %48 = tpu.matmul %46, %47, %cst_35 {dimension_numbers = #tpu.dot_dimension_numbers<[1], [0], [0], [1], [0, 0, 1, 1], [], []>} : vector<128x128xbf16>, vector<128x128xbf16>, vector<128x128xf32> -> vector<128x128xf32>
    %cst_36 = arith.constant 1.000000e-24 : f32
    %49 = vector.broadcast %cst_36 : f32 to vector<128x128xf32>
    %50 = arith.maximumf %48, %49 : vector<128x128xf32>
    %51 = math.rsqrt %50 : vector<128x128xf32>
    %52 = arith.mulf %44, %51 : vector<128x128xf32>
    %cst_37 = arith.constant 0.000000e+00 : f32
    %53 = vector.broadcast %cst_37 : f32 to vector<128x128xf32>
    %54 = arith.subf %53, %39 : vector<128x128xf32>
    %55 = math.exp %54 : vector<128x128xf32>
    %cst_38 = arith.constant 1.000000e+00 : f32
    %56 = vector.broadcast %cst_38 : f32 to vector<128x128xf32>
    %57 = arith.addf %56, %55 : vector<128x128xf32>
    %cst_39 = arith.constant 1.000000e+00 : f32
    %58 = vector.broadcast %cst_39 : f32 to vector<128x128xf32>
    %59 = arith.divf %58, %57 : vector<128x128xf32>
    %cst_40 = arith.constant 0.000000e+00 : f32
    %60 = vector.broadcast %cst_40 : f32 to vector<128x128xf32>
    %61 = arith.maximumf %39, %60 : vector<128x128xf32>
    %62 = math.absf %39 : vector<128x128xf32>
    %cst_41 = arith.constant 0.000000e+00 : f32
    %63 = vector.broadcast %cst_41 : f32 to vector<128x128xf32>
    %64 = arith.subf %63, %62 : vector<128x128xf32>
    %65 = math.exp %64 : vector<128x128xf32>
    %cst_42 = arith.constant 1.000000e+00 : f32
    %66 = vector.broadcast %cst_42 : f32 to vector<128x128xf32>
    %67 = arith.addf %66, %65 : vector<128x128xf32>
    %68 = math.log %67 : vector<128x128xf32>
    %69 = arith.addf %61, %68 : vector<128x128xf32>
    %cst_43 = arith.constant 1.000000e-01 : f32
    %70 = vector.broadcast %cst_43 : f32 to vector<128x128xf32>
    %71 = arith.mulf %70, %69 : vector<128x128xf32>
    %72 = tpu.iota {dimensions = array<i32: 1>} : vector<128x128xi32>
    %c3_i32 = arith.constant 3 : i32
    %73 = vector.broadcast %c3_i32 : i32 to vector<128x128xi32>
    %74 = arith.cmpi slt, %72, %73 : vector<128x128xi32>
    %c3_i32_44 = arith.constant 3 : i32
    %75 = vector.broadcast %c3_i32_44 : i32 to vector<128x128xi32>
    %76 = arith.cmpi eq, %72, %75 : vector<128x128xi32>
    %c11_i32 = arith.constant 11 : i32
    %77 = vector.broadcast %c11_i32 : i32 to vector<128x128xi32>
    %78 = arith.cmpi sge, %72, %77 : vector<128x128xi32>
    %c14_i32 = arith.constant 14 : i32
    %79 = vector.broadcast %c14_i32 : i32 to vector<128x128xi32>
    %80 = arith.cmpi slt, %72, %79 : vector<128x128xi32>
    %81 = arith.andi %78, %80 : vector<128x128xi1>
    %82 = arith.ori %76, %81 : vector<128x128xi1>
    %c4_i32 = arith.constant 4 : i32
    %83 = vector.broadcast %c4_i32 : i32 to vector<128x128xi32>
    %84 = arith.cmpi sge, %72, %83 : vector<128x128xi32>
    %c7_i32 = arith.constant 7 : i32
    %85 = vector.broadcast %c7_i32 : i32 to vector<128x128xi32>
    %86 = arith.cmpi slt, %72, %85 : vector<128x128xi32>
    %87 = arith.andi %84, %86 : vector<128x128xi1>
    %c7_i32_45 = arith.constant 7 : i32
    %88 = vector.broadcast %c7_i32_45 : i32 to vector<128x128xi32>
    %89 = arith.cmpi eq, %72, %88 : vector<128x128xi32>
    %cst_46 = arith.constant 1.000000e+00 : f32
    %cst_47 = arith.constant 0.000000e+00 : f32
    %90 = vector.broadcast %cst_46 : f32 to vector<128x128xf32>
    %91 = vector.broadcast %cst_47 : f32 to vector<128x128xf32>
    %92 = arith.select %89, %90, %91 : vector<128x128xi1>, vector<128x128xf32>
    %93 = arith.select %87, %71, %92 : vector<128x128xi1>, vector<128x128xf32>
    %94 = arith.select %82, %59, %93 : vector<128x128xi1>, vector<128x128xf32>
    %95 = arith.select %74, %52, %94 : vector<128x128xi1>, vector<128x128xf32>
    %c0_48 = arith.constant 0 : index
    %c0_49 = arith.constant 0 : index
    %96 = vector.load %arg13[%c0_48, %c0_49] : memref<192x128xf32, #tpu.memory_space<vmem>>, vector<64x128xf32>
    tpu.vector_store %arg13[%c0_48, %c0_49], %5 {strides = array<i32>} : memref<192x128xf32, #tpu.memory_space<vmem>>, vector<64x128xf32>,
    %c64 = arith.constant 64 : index
    %c0_50 = arith.constant 0 : index
    %97 = vector.load %arg13[%c64, %c0_50] : memref<192x128xf32, #tpu.memory_space<vmem>>, vector<128x128xf32>
    tpu.vector_store %arg13[%c64, %c0_50], %95 {strides = array<i32>} : memref<192x128xf32, #tpu.memory_space<vmem>>, vector<128x128xf32>,
    return
  }
}

</mosaic_0001>

<bundles_post_ra>
// kernel: gamba_forward.1
= control target key start
LH: loop header
LB: loop body
LE: loop exit
PB: predicated region body
PF: predicated region fallthrough
CT: control target
= control target key end

     0   :  { %vm325_vm0 = vcmask 261120   ;;  %v2436_v18 = vmov 0   ;;  %vm168_vm1 = vcmask 130048   ;;  %s3324_s4 = inlined_call_operand.vmem [shape: bf16[32,128], index: 4, kind: input, shape index: {}]   ;;  %s3325_s3 = inlined_call_operand.vmem [shape: bf16[128,32], index: 3, kind: input, shape index: {}]   ;;  %s3326_s6 = inlined_call_operand.vmem [shape: bf16[128,128], index: 6, kind: input, shape index: {}]   ;;  %s3327_s1 = inlined_call_operand.vmem [shape: bf16[144,128], index: 1, kind: input, shape index: {}]   ;;  %s3328_s5 = inlined_call_operand.vmem [shape: f32[1,128], index: 5, kind: input, shape index: {}]   ;;  %s3329_s0 = inlined_call_operand.vmem [shape: bf16[64,144], index: 0, kind: input, shape index: {}]   ;;  %s3330_s8 = inlined_call_operand.vmem [shape: bf16[128,128], index: 8, kind: input, shape index: {}]   ;;  %s3331_s10 = inlined_call_operand.vmem [shape: bf16[128,128], index: 10, kind: input, shape index: {}]   ;;  %s3332_s12 = inlined_call_operand.vmem [shape: bf16[128,128], index: 12, kind: input, shape index: {}]   ;;  %s3333_s7 = inlined_call_operand.vmem [shape: f32[1,128], index: 7, kind: input, shape index: {}]   ;;  %s3334_s2 = inlined_call_operand.vmem [shape: f32[1,128], index: 2, kind: input, shape index: {}]   ;;  %s3335_s13 = inlined_call_operand.vmem [shape: f32[192,128], index: 13, kind: output, shape index: {}]   ;;  %s3336_s9 = inlined_call_operand.vmem [shape: f32[1,128], index: 9, kind: input, shape index: {}]   ;;  %s3337_s11 = inlined_call_operand.vmem [shape: f32[1,128], index: 11, kind: input, shape index: {}]  }
   0x1   :  { %v2085_v0 = vld [vmem:[%s3324_s4] sm:$0xff]   ;;  %v2086_v1 = vld [vmem:[%s3324_s4 + $0x8] sm:$0xff]   ;;  %v2089_v4 = vld [vmem:[%s3325_s3 + $0x10] sm:$0xff]   ;;  %181 = vmatprep.subr.bf16.mxu0 %v2436_v18 }
   0x2   :  { %1919 = vmatprep.subr.bf16.mxu1 %v2085_v0  ;;  %v2087_v2 = vld [vmem:[%s3325_s3] sm:$0xff]   ;;  %v2088_v3 = vld [vmem:[%s3325_s3 + $0x8] sm:$0xff]   ;;  %v2090_v5 = vld [vmem:[%s3325_s3 + $0x18] sm:$0xff]  }
   0x3   :  { %1920 = vmatpush3.bf16.msra.mxu1 %v2085_v0  ;;  %1923 = vmatprep.mubr.msk.bf16.mxu1 %vm325_vm0, %v2087_v2  ;;  %v2091_v6 = vld [vmem:[%s3325_s3 + $0x20] sm:$0xff]   ;;  %v2092_v7 = vld [vmem:[%s3325_s3 + $0x28] sm:$0xff]   ;;  %v2093_v8 = vld [vmem:[%s3325_s3 + $0x30] sm:$0xff]  }
   0x4   :  { %1921 = vmatprep.subr.bf16.mxu1 %v2086_v1  ;;  %v2094_v9 = vld [vmem:[%s3325_s3 + $0x38] sm:$0xff]   ;;  %v2095_v10 = vld [vmem:[%s3326_s6] sm:$0xff]   ;;  %v2096_v11 = vld [vmem:[%s3326_s6 + $0x8] sm:$0xff]  }
   0x5   :  { %v2097_v12 = vld [vmem:[%s3326_s6 + $0x10] sm:$0xff]   ;;  %v2098_v13 = vld [vmem:[%s3326_s6 + $0x18] sm:$0xff]   ;;  %v2099_v14 = vld [vmem:[%s3326_s6 + $0x20] sm:$0xff]  }
   0x6   :  { %v2100_v15 = vld [vmem:[%s3326_s6 + $0x28] sm:$0xff]   ;;  %v2101_v16 = vld [vmem:[%s3326_s6 + $0x30] sm:$0xff]   ;;  %v2102_v17 = vld [vmem:[%s3326_s6 + $0x38] sm:$0xff]  }
   0x7   :  { %1922 = vmatpush3.bf16.msra.mxu1 %v2086_v1  ;;  %v2103_v19 = vld [vmem:[%s3327_s1] sm:$0xff]   ;;  %v2104_v20 = vld [vmem:[%s3327_s1 + $0x8] sm:$0xff]   ;;  %v2105_v21 = vld [vmem:[%s3327_s1 + $0x10] sm:$0xff]  }
   0x8   :  { %1939 = vmatprep.subr.bf16.mxu1 %v2095_v10  ;;  %182 = vmatpush1.bf16.msra.mxu0 %v2103_v19  ;;  %v2106_v22 = vld [vmem:[%s3327_s1 + $0x18] sm:$0xff]   ;;  %v2107_v23 = vld [vmem:[%s3327_s1 + $0x20] sm:$0xff]   ;;  %v2108_v24 = vld [vmem:[%s3327_s1 + $0x28] sm:$0xff]  }
   0x9   :  { %183 = vmatprep.subr.bf16.mxu0 %v2436_v18  ;;  %v2109_v25 = vld [vmem:[%s3327_s1 + $0x30] sm:$0xff]   ;;  %v2110_v26 = vld [vmem:[%s3327_s1 + $0x38] sm:$0xff]   ;;  %v2597_v27 = vld [vmem:[%s3328_s5] ss:$0 sm:$0xff] }
   0xa   :  { %1924 = vmatmul.mubr.msk.bf16.vlgmr.msra.gmra.mrb[0].mxu1 %vm325_vm0, %v2088_v3 }
   0xb   :  { %1927 = vmatprep.mubr.msk.bf16.mxu1 %vm325_vm0, %v2089_v4  ;;  %1940 = vmatpush3.bf16.msra.mxu1 %v2095_v10 }
   0xc   :  { %1941 = vmatprep.subr.bf16.mxu1 %v2096_v11  ;;  %184 = vmatpush1.bf16.msra.mxu0 %v2104_v20 }
   0xd   :  { %185 = vmatprep.subr.bf16.mxu0 %v2436_v18 }
   0xf   :  { %1942 = vmatpush3.bf16.msra.mxu1 %v2096_v11 }
  0x10   :  { %1943 = vmatprep.subr.bf16.mxu1 %v2097_v12  ;;  %186 = vmatpush1.bf16.msra.mxu0 %v2105_v21 }
  0x11   :  { %187 = vmatprep.subr.bf16.mxu0 %v2436_v18 }
  0x12   :  { %1928 = vmatmul.mubr.msk.bf16.gmra.mrb[4].mxu1 %vm325_vm0, %v2090_v5 }
  0x13   :  { %1931 = vmatprep.mubr.msk.bf16.mxu1 %vm325_vm0, %v2091_v6  ;;  %1944 = vmatpush3.bf16.msra.mxu1 %v2097_v12 }
  0x14   :  { %1945 = vmatprep.subr.bf16.mxu1 %v2098_v13  ;;  %188 = vmatpush1.bf16.msra.mxu0 %v2106_v22 }
  0x15   :  { %189 = vmatprep.subr.bf16.mxu0 %v2436_v18 }
  0x17   :  { %1946 = vmatpush3.bf16.msra.mxu1 %v2098_v13 }
  0x18   :  { %1947 = vmatprep.subr.bf16.mxu1 %v2099_v14  ;;  %190 = vmatpush1.bf16.msra.mxu0 %v2107_v23 }
  0x19   :  { %191 = vmatprep.subr.bf16.mxu0 %v2436_v18 }
  0x1a   :  { %1932 = vmatmul.mubr.msk.bf16.gmra.mrb[8].mxu1 %vm325_vm0, %v2092_v7 }
  0x1b   :  { %1935 = vmatprep.mubr.msk.bf16.mxu1 %vm325_vm0, %v2093_v8  ;;  %1948 = vmatpush3.bf16.msra.mxu1 %v2099_v14 }
  0x1c   :  { %1949 = vmatprep.subr.bf16.mxu1 %v2100_v15  ;;  %192 = vmatpush1.bf16.msra.mxu0 %v2108_v24 }
  0x1d   :  { %193 = vmatprep.subr.bf16.mxu0 %v2436_v18 }
  0x1f   :  { %1950 = vmatpush3.bf16.msra.mxu1 %v2100_v15 }
  0x20   :  { %1951 = vmatprep.subr.bf16.mxu1 %v2101_v16  ;;  %194 = vmatpush1.bf16.msra.mxu0 %v2109_v25 }
  0x21   :  { %195 = vmatprep.subr.bf16.mxu0 %v2436_v18 }
  0x22   :  { %1936 = vmatmul.mubr.msk.bf16.gmra.mrb[12].mxu1 %vm325_vm0, %v2094_v9 }
  0x23   :  { %1952 = vmatpush3.bf16.msra.mxu1 %v2101_v16 }
  0x24   :  { %1953 = vmatprep.subr.bf16.mxu1 %v2102_v17  ;;  %196 = vmatpush1.bf16.msra.mxu0 %v2110_v26 }
  0x25   :  { %197 = vmatprep.subr.bf16.mxu0 %v2436_v18 }
  0x27   :  { %1954 = vmatpush3.bf16.msra.mxu1 %v2102_v17 }
  0xdd   :  { %v1925_v28 = vpop.f32.mrb[0].mxu1 }
  0xde   :  { %v2600_v29 = vadd.f32 %v1925_v28, %v2597_v27  ;;  %v384_v30 = vpop.f32.mrb[1].mxu1 }
  0xdf   :  { %v2603_v31 = vadd.f32 %v2597_v27, %v384_v30  ;;  %v1926_v32 = vpop.f32.mrb[2].mxu1 }
  0xe0   :  { %v449_v33 = vsub.f32 0.0, %v2600_v29  ;;  %v2607_v34 = vadd.f32 %v1926_v32, %v2597_v27  ;;  %v387_v35 = vpop.f32.mrb[3].mxu1 }
  0xe1   :  { %v447_v36 = vsub.f32 0.0, %v2603_v31  ;;  %v2611_v37 = vadd.f32 %v2597_v27, %v387_v35 }
  0xe2   :  { %v467_v38 = vmul.f32 1.442695, %v449_v33  ;;  %v450_v39 = vsub.f32 0.0, %v2607_v34 }
  0xe3   :  { %v463_v40 = vmul.f32 1.442695, %v447_v36  ;;  %v448_v41 = vsub.f32 0.0, %v2611_v37 }
  0xe4   :  { %2148 = vpow2.f32 %v467_v38  ;;  %v469_v42 = vmul.f32 1.442695, %v450_v39 }
  0xe5   :  { %2150 = vpow2.f32 %v463_v40  ;;  %v465_v43 = vmul.f32 1.442695, %v448_v41  ;;  %v1929_v44 = vpop.f32.mrb[4].mxu1 }
  0xe6   :  { %2152 = vpow2.f32 %v469_v42  ;;  %v2616_v45 = vadd.f32 %v1929_v44, %v2597_v27  ;;  %v400_v46 = vpop.f32.mrb[5].mxu1 }
  0xe7   :  { %2154 = vpow2.f32 %v465_v43  ;;  %v2619_v47 = vadd.f32 %v2597_v27, %v400_v46  ;;  %v1930_v48 = vpop.f32.mrb[6].mxu1 }
  0xe8   :  { %v453_v49 = vsub.f32 0.0, %v2616_v45  ;;  %v2623_v50 = vadd.f32 %v1930_v48, %v2597_v27  ;;  %v403_v51 = vpop.f32.mrb[7].mxu1 }
  0xe9   :  { %v451_v52 = vsub.f32 0.0, %v2619_v47  ;;  %v2627_v53 = vadd.f32 %v2597_v27, %v403_v51 }
  0xea   :  { %v475_v54 = vmul.f32 1.442695, %v453_v49  ;;  %v454_v55 = vsub.f32 0.0, %v2623_v50 }
  0xeb   :  { %v471_v56 = vmul.f32 1.442695, %v451_v52  ;;  %v452_v57 = vsub.f32 0.0, %v2627_v53 }
  0xec   :  { %2156 = vpow2.f32 %v475_v54  ;;  %v477_v58 = vmul.f32 1.442695, %v454_v55 }
  0xed   :  { %2158 = vpow2.f32 %v471_v56  ;;  %v473_v59 = vmul.f32 1.442695, %v452_v57  ;;  %v1933_v60 = vpop.f32.mrb[8].mxu1 }
  0xee   :  { %v2149_v61 = vpop.eup %2148  ;;  %2160 = vpow2.f32 %v477_v58  ;;  %v2632_v62 = vadd.f32 %v1933_v60, %v2597_v27  ;;  %v416_v63 = vpop.f32.mrb[9].mxu1 }
  0xef   :  { %v2151_v0 = vpop.eup %2150  ;;  %v497_v1 = vadd.f32 1.0, %v2149_v61  ;;  %2162 = vpow2.f32 %v473_v59  ;;  %v2635_v2 = vadd.f32 %v2597_v27, %v416_v63  ;;  %v1934_v3 = vpop.f32.mrb[10].mxu1 }
  0xf0   :  { %v2153_v4 = vpop.eup %2152  ;;  %v495_v5 = vadd.f32 1.0, %v2151_v0  ;;  %v457_v6 = vsub.f32 0.0, %v2632_v62  ;;  %v2639_v7 = vadd.f32 %v1934_v3, %v2597_v27  ;;  %v419_v8 = vpop.f32.mrb[11].mxu1 }
  0xf1   :  { %v2155_v9 = vpop.eup %2154  ;;  %2164 = vrcp.f32 %v497_v1  ;;  %v498_v10 = vadd.f32 1.0, %v2153_v4  ;;  %v455_v11 = vsub.f32 0.0, %v2635_v2  ;;  %v2643_v12 = vadd.f32 %v2597_v27, %v419_v8 }
  0xf2   :  { %2166 = vrcp.f32 %v495_v5  ;;  %v496_v13 = vadd.f32 1.0, %v2155_v9  ;;  %v483_v14 = vmul.f32 1.442695, %v457_v6  ;;  %v458_v15 = vsub.f32 0.0, %v2639_v7 }
  0xf3   :  { %2168 = vrcp.f32 %v498_v10  ;;  %v479_v16 = vmul.f32 1.442695, %v455_v11  ;;  %v456_v17 = vsub.f32 0.0, %v2643_v12 }
  0xf4   :  { %2170 = vrcp.f32 %v496_v13  ;;  %v485_v18 = vmul.f32 1.442695, %v458_v15 }
  0xf5   :  { %2172 = vpow2.f32 %v483_v14  ;;  %v481_v19 = vmul.f32 1.442695, %v456_v17  ;;  %v1937_v20 = vpop.f32.mrb[12].mxu1 }
  0xf6   :  { %v2157_v21 = vpop.eup %2156  ;;  %2174 = vpow2.f32 %v479_v16  ;;  %v2648_v22 = vadd.f32 %v1937_v20, %v2597_v27  ;;  %v432_v23 = vpop.f32.mrb[13].mxu1 }
  0xf7   :  { %v2159_v24 = vpop.eup %2158  ;;  %v501_v25 = vadd.f32 1.0, %v2157_v21  ;;  %2176 = vpow2.f32 %v485_v18  ;;  %v2651_v26 = vadd.f32 %v2597_v27, %v432_v23  ;;  %v1938_v28 = vpop.f32.mrb[14].mxu1 }
  0xf8   :  { %v2161_v30 = vpop.eup %2160  ;;  %v499_v32 = vadd.f32 1.0, %v2159_v24  ;;  %2178 = vpow2.f32 %v481_v19  ;;  %v461_v33 = vsub.f32 0.0, %v2648_v22  ;;  %v2655_v35 = vadd.f32 %v1938_v28, %v2597_v27  ;;  %v435_v36 = vpop.f32.mrb[15].mxu1 }
  0xf9   :  { %v2163_v38 = vpop.eup %2162  ;;  %2180 = vrcp.f32 %v501_v25  ;;  %v502_v39 = vadd.f32 1.0, %v2161_v30  ;;  %v459_v40 = vsub.f32 0.0, %v2651_v26  ;;  %v2659_v41 = vadd.f32 %v2597_v27, %v435_v36 }
  0xfa   :  { %2182 = vrcp.f32 %v499_v32  ;;  %v500_v42 = vadd.f32 1.0, %v2163_v38  ;;  %v491_v43 = vmul.f32 1.442695, %v461_v33  ;;  %v462_v44 = vsub.f32 0.0, %v2655_v35 }
  0xfb   :  { %v2165_v46 = vpop.eup %2164  ;;  %2184 = vrcp.f32 %v502_v39  ;;  %v487_v48 = vmul.f32 1.442695, %v459_v40  ;;  %v460_v49 = vsub.f32 0.0, %v2659_v41 }
  0xfc   :  { %v2167_v51 = vpop.eup %2166  ;;  %2186 = vrcp.f32 %v500_v42  ;;  %v493_v52 = vmul.f32 1.442695, %v462_v44  ;;  %v545_v27 = vmul.f32 %v2165_v46, %v2600_v29 }
  0xfd   :  { %v2169_v54 = vpop.eup %2168  ;;  %2188 = vpow2.f32 %v491_v43  ;;  %v489_v55 = vmul.f32 1.442695, %v460_v49  ;;  %v543_v59 = vmul.f32 %v2167_v51, %v2603_v31  ;;  %v2118_v49 = vld [vmem:[%s3329_s0 + $0x14] ss:$8 sps:$4 sm:$0xff]   ;;  %v2120_v51 = vld [vmem:[%s3331_s10 + $0x8] sm:$0xff]  }
  0xfe   :  { %v2171_v56 = vpop.eup %2170  ;;  %v546_v57 = vmul.f32 %v2169_v54, %v2607_v34  ;;  %2190 = vpow2.f32 %v487_v48  ;;  %v2114_v48 = vld [vmem:[%s3329_s0 + $0x4] ss:$8 sps:$4 sm:$0xff]   ;;  %v2122_v54 = vld [vmem:[%s3330_s8 + $0x10] sm:$0xff]  }
  0xff   :  { %v2173_v58 = vpop.eup %2172  ;;  %v544_v60 = vmul.f32 %v2171_v56, %v2611_v37  ;;  %2192 = vpow2.f32 %v493_v52  ;;  %1787 = vmatprep.mubr.msk.bf16.mxu0 %vm168_vm1, %v2114_v48  ;;  %v2121_v52 = vld [vmem:[%s3329_s0 + $0x10] ss:$8 sps:$4 sm:$0xff]  }
 0x100   :  { %v2175_v61 = vpop.eup %2174  ;;  %v560_v63 = vpack.c.bf16 %v546_v57, %v545_v27  ;;  %v505_v0 = vadd.f32 1.0, %v2173_v58  ;;  %2194 = vpow2.f32 %v489_v55  ;;  %v2123_v55 = vld [vmem:[%s3331_s10 + $0x10] sm:$0xff]   ;;  %v2124_v56 = vld [vmem:[%s3330_s8 + $0x18] sm:$0xff]   ;;  %v2125_v27 = vld [vmem:[%s3329_s0 + $0x24] ss:$8 sps:$4 sm:$0xff]  }
 0x101   :  { %v2177_v1 = vpop.eup %2176  ;;  %v503_v3 = vadd.f32 1.0, %v2175_v61  ;;  %v559_v4 = vpack.c.bf16 %v544_v60, %v543_v59  ;;  %v2127_v57 = vld [vmem:[%s3331_s10 + $0x18] sm:$0xff]   ;;  %v2128_v58 = vld [vmem:[%s3329_s0 + $0x20] ss:$8 sps:$4 sm:$0xff]  }
 0x102   :  { %v2179_v5 = vpop.eup %2178  ;;  %2196 = vrcp.f32 %v505_v0  ;;  %v506_v6 = vadd.f32 1.0, %v2177_v1  ;;  %v2129_v59 = vld [vmem:[%s3330_s8 + $0x20] sm:$0xff]   ;;  %v2131_v61 = vld [vmem:[%s3330_s8 + $0x28] sm:$0xff]   ;;  %v2135_v1 = vld [vmem:[%s3329_s0 + $0x30] ss:$8 sps:$4 sm:$0xff]  }
 0x103   :  { %v2181_v29 = vpop.eup %2180  ;;  %2198 = vrcp.f32 %v503_v3  ;;  %v504_v34 = vadd.f32 1.0, %v2179_v5  ;;  %1955 = vmatprep.mubr.bf16.mxu1 %v559_v4  ;;  %v2130_v60 = vld [vmem:[%s3331_s10 + $0x20] sm:$0xff]   ;;  %v2134_v0 = vld [vmem:[%s3331_s10 + $0x28] sm:$0xff]   ;;  %v2136_v3 = vld [vmem:[%s3330_s8 + $0x30] sm:$0xff]  }
 0x104   :  { %v2183_v8 = vpop.eup %2182  ;;  %2200 = vrcp.f32 %v506_v6  ;;  %1956 = vmatmul.mubr.bf16.vlgmr.msra.gmra.mrb[16].mxu1 %v560_v63  ;;  %v549_v9 = vmul.f32 %v2181_v29, %v2616_v45  ;;  %v2132_v63 = vld [vmem:[%s3329_s0 + $0x34] ss:$8 sps:$4 sm:$0xff]   ;;  %v2761_v29 = vld [vmem:[%s3332_s12] sm:$0xff]  }
 0x105   :  { %v2185_v31 = vpop.eup %2184  ;;  %2202 = vrcp.f32 %v504_v34  ;;  %v547_v13 = vmul.f32 %v2183_v8, %v2619_v47  ;;  %v2137_v4 = vld [vmem:[%s3331_s10 + $0x30] sm:$0xff]   ;;  %v2138_v5 = vld [vmem:[%s3330_s8 + $0x38] sm:$0xff]   ;;  %v2768_v34 = vld [vmem:[%s3333_s7] ss:$0 sm:$0xff] }
 0x106   :  { %v2187_v37 = vpop.eup %2186  ;;  %v550_v10 = vmul.f32 %v2185_v31, %v2623_v50  ;;  %v2139_v6 = vld [vmem:[%s3331_s10 + $0x38] sm:$0xff]  }
 0x107   :  { %v2189_v11 = vpop.eup %2188  ;;  %v548_v14 = vmul.f32 %v2187_v37, %v2627_v53 }
 0x108   :  { %v2191_v15 = vpop.eup %2190  ;;  %v509_v16 = vadd.f32 1.0, %v2189_v11  ;;  %v562_v17 = vpack.c.bf16 %v550_v10, %v549_v9 }
 0x109   :  { %v2193_v18 = vpop.eup %2192  ;;  %v507_v19 = vadd.f32 1.0, %v2191_v15  ;;  %v561_v20 = vpack.c.bf16 %v548_v14, %v547_v13 }
 0x10a   :  { %v2195_v21 = vpop.eup %2194  ;;  %2204 = vrcp.f32 %v509_v16  ;;  %v510_v23 = vadd.f32 1.0, %v2193_v18 }
 0x10b   :  { %2206 = vrcp.f32 %v507_v19  ;;  %v508_v24 = vadd.f32 1.0, %v2195_v21  ;;  %1959 = vmatprep.mubr.bf16.mxu1 %v561_v20 }
 0x10c   :  { %v2197_v45 = vpop.eup %2196  ;;  %2208 = vrcp.f32 %v510_v23  ;;  %1960 = vmatmul.mubr.bf16.gmra.mrb[20].mxu1 %v562_v17 }
 0x10d   :  { %v2199_v50 = vpop.eup %2198  ;;  %2210 = vrcp.f32 %v508_v24  ;;  %v553_v53 = vmul.f32 %v2197_v45, %v2632_v62 }
 0x10e   :  { %v2201_v47 = vpop.eup %2200  ;;  %v551_v30 = vmul.f32 %v2199_v50, %v2635_v2 }
 0x10f   :  { %v2203_v25 = vpop.eup %2202  ;;  %v554_v28 = vmul.f32 %v2201_v47, %v2639_v7 }
 0x110   :  { %v552_v32 = vmul.f32 %v2203_v25, %v2643_v12  ;;  %v2111_v12 = vld [vmem:[%s3327_s1 + $0x40] sm:$0xff]  }
 0x111   :  { %v564_v33 = vpack.c.bf16 %v554_v28, %v553_v53  ;;  %198 = vmatpush1.bf16.msra.mxu0 %v2111_v12 }
 0x112   :  { %v563_v36 = vpack.c.bf16 %v552_v32, %v551_v30 }
 0x114   :  { %v2205_v38 = vpop.eup %2204  ;;  %1963 = vmatprep.mubr.bf16.mxu1 %v563_v36 }
 0x115   :  { %v2207_v39 = vpop.eup %2206  ;;  %1964 = vmatmul.mubr.bf16.gmra.mrb[24].mxu1 %v564_v33  ;;  %v557_v43 = vmul.f32 %v2205_v38, %v2648_v22  ;;  %v2112_v22 = vld [vmem:[%s3329_s0] ss:$8 sps:$4 sm:$0xff]  }
 0x116   :  { %v2209_v40 = vpop.eup %2208  ;;  %v555_v62 = vmul.f32 %v2207_v39, %v2651_v26  ;;  %214 = vmatmul.mubr.bf16.vlgmr.msra.gmra.mrb[0].mxu0 %v2112_v22  ;;  %v2115_v26 = vld [vmem:[%s3330_s8] sm:$0xff]  }
 0x117   :  { %v2211_v42 = vpop.eup %2210  ;;  %v558_v44 = vmul.f32 %v2209_v40, %v2655_v35  ;;  %v2116_v35 = vld [vmem:[%s3331_s10] sm:$0xff]   ;;  %1971 = vmatprep.subr.bf16.mxu0 %v2115_v26  ;;  %1788 = vmatprep.mubr.msk.bf16.mxu0 %vm168_vm1, %v2118_v49 }
 0x118   :  { %v556_v7 = vmul.f32 %v2211_v42, %v2659_v41  ;;  %1972 = vmatpush3.bf16.msra.mxu0 %v2115_v26  ;;  %2003 = vmatprep.subr.bf16.mxu1 %v2116_v35  ;;  %v2117_v41 = vld [vmem:[%s3330_s8 + $0x8] sm:$0xff]  }
 0x119   :  { %v566_v46 = vpack.c.bf16 %v558_v44, %v557_v43  ;;  %2004 = vmatpush3.bf16.msra.mxu1 %v2116_v35  ;;  %1973 = vmatprep.subr.bf16.mxu0 %v2117_v41 }
 0x11a   :  { %v565_v2 = vpack.c.bf16 %v556_v7, %v555_v62  ;;  %2005 = vmatprep.subr.bf16.mxu1 %v2120_v51 }
 0x11c   :  { %1967 = vmatprep.mubr.bf16.mxu1 %v565_v2  ;;  %1974 = vmatpush3.bf16.msra.mxu0 %v2117_v41 }
 0x11d   :  { %1968 = vmatmul.mubr.bf16.gmra.mrb[28].mxu1 %v566_v46  ;;  %1975 = vmatprep.subr.bf16.mxu0 %v2122_v54 }
 0x11e   :  { %222 = vmatmul.mubr.bf16.gmra.mrb[4].mxu0 %v2121_v52  ;;  %2006 = vmatpush3.bf16.msra.mxu1 %v2120_v51 }
 0x11f   :  { %2007 = vmatprep.subr.bf16.mxu1 %v2123_v55  ;;  %1789 = vmatprep.mubr.msk.bf16.mxu0 %vm168_vm1, %v2125_v27 }
 0x120   :  { %1976 = vmatpush3.bf16.msra.mxu0 %v2122_v54 }
 0x121   :  { %1977 = vmatprep.subr.bf16.mxu0 %v2124_v56 }
 0x122   :  { %2008 = vmatpush3.bf16.msra.mxu1 %v2123_v55 }
 0x123   :  { %2009 = vmatprep.subr.bf16.mxu1 %v2127_v57 }
 0x124   :  { %1978 = vmatpush3.bf16.msra.mxu0 %v2124_v56 }
 0x125   :  { %1979 = vmatprep.subr.bf16.mxu0 %v2129_v59 }
 0x126   :  { %230 = vmatmul.mubr.bf16.gmra.mrb[8].mxu0 %v2128_v58  ;;  %2010 = vmatpush3.bf16.msra.mxu1 %v2127_v57 }
 0x127   :  { %2011 = vmatprep.subr.bf16.mxu1 %v2130_v60  ;;  %1790 = vmatprep.mubr.msk.bf16.mxu0 %vm168_vm1, %v2132_v63 }
 0x128   :  { %1980 = vmatpush3.bf16.msra.mxu0 %v2129_v59 }
 0x129   :  { %1981 = vmatprep.subr.bf16.mxu0 %v2131_v61 }
 0x12a   :  { %2012 = vmatpush3.bf16.msra.mxu1 %v2130_v60 }
 0x12b   :  { %2013 = vmatprep.subr.bf16.mxu1 %v2134_v0 }
 0x12c   :  { %1982 = vmatpush3.bf16.msra.mxu0 %v2131_v61 }
 0x12d   :  { %1983 = vmatprep.subr.bf16.mxu0 %v2136_v3 }
 0x12e   :  { %238 = vmatmul.mubr.bf16.gmra.mrb[12].mxu0 %v2135_v1  ;;  %2014 = vmatpush3.bf16.msra.mxu1 %v2134_v0 }
 0x12f   :  { %2015 = vmatprep.subr.bf16.mxu1 %v2137_v4 }
 0x130   :  { %1984 = vmatpush3.bf16.msra.mxu0 %v2136_v3 }
 0x131   :  { %1985 = vmatprep.subr.bf16.mxu0 %v2138_v5 }
 0x132   :  { %2016 = vmatpush3.bf16.msra.mxu1 %v2137_v4 }
 0x133   :  { %2017 = vmatprep.subr.bf16.mxu1 %v2139_v6 }
 0x134   :  { %1986 = vmatpush3.bf16.msra.mxu0 %v2138_v5 }
 0x135   :  { %2035 = vmatprep.subr.bf16.mxu0 %v2761_v29 }
 0x136   :  { %2018 = vmatpush3.bf16.msra.mxu1 %v2139_v6 }
 0x137   :  { %2067 = vmatprep.subr.bf16.mxu1 %v2761_v29 }
 0x1d7   :  { %v1957_v8 = vpop.f32.mrb[16].mxu1 }
 0x1d8   :  { %v2771_v31 = vadd.f32 %v1957_v8, %v2768_v34  ;;  %v672_v37 = vpop.f32.mrb[17].mxu1 }
 0x1d9   :  { %v2774_v9 = vadd.f32 %v2768_v34, %v672_v37  ;;  %v1958_v10 = vpop.f32.mrb[18].mxu1 }
 0x1da   :  { %v737_v11 = vsub.f32 0.0, %v2771_v31  ;;  %v2778_v13 = vadd.f32 %v1958_v10, %v2768_v34  ;;  %v675_v14 = vpop.f32.mrb[19].mxu1 }
 0x1db   :  { %v735_v15 = vsub.f32 0.0, %v2774_v9  ;;  %v2782_v16 = vadd.f32 %v2768_v34, %v675_v14 }
 0x1dc   :  { %v755_v17 = vmul.f32 1.442695, %v737_v11  ;;  %v738_v18 = vsub.f32 0.0, %v2778_v13 }
 0x1dd   :  { %v751_v19 = vmul.f32 1.442695, %v735_v15  ;;  %v736_v20 = vsub.f32 0.0, %v2782_v16 }
 0x1de   :  { %2212 = vpow2.f32 %v755_v17  ;;  %v757_v21 = vmul.f32 1.442695, %v738_v18 }
 0x1df   :  { %2214 = vpow2.f32 %v751_v19  ;;  %v753_v23 = vmul.f32 1.442695, %v736_v20  ;;  %v1961_v24 = vpop.f32.mrb[20].mxu1 }
 0x1e0   :  { %2216 = vpow2.f32 %v757_v21  ;;  %v2787_v45 = vadd.f32 %v1961_v24, %v2768_v34  ;;  %v688_v50 = vpop.f32.mrb[21].mxu1 }
 0x1e1   :  { %2218 = vpow2.f32 %v753_v23  ;;  %v2790_v47 = vadd.f32 %v2768_v34, %v688_v50  ;;  %v1962_v25 = vpop.f32.mrb[22].mxu1 }
 0x1e2   :  { %v741_v53 = vsub.f32 0.0, %v2787_v45  ;;  %v2794_v28 = vadd.f32 %v1962_v25, %v2768_v34  ;;  %v691_v30 = vpop.f32.mrb[23].mxu1 }
 0x1e3   :  { %v739_v32 = vsub.f32 0.0, %v2790_v47  ;;  %v2798_v33 = vadd.f32 %v2768_v34, %v691_v30 }
 0x1e4   :  { %v763_v36 = vmul.f32 1.442695, %v741_v53  ;;  %v742_v38 = vsub.f32 0.0, %v2794_v28 }
 0x1e5   :  { %v759_v39 = vmul.f32 1.442695, %v739_v32  ;;  %v740_v40 = vsub.f32 0.0, %v2798_v33 }
 0x1e6   :  { %2220 = vpow2.f32 %v763_v36  ;;  %v765_v42 = vmul.f32 1.442695, %v742_v38 }
 0x1e7   :  { %2222 = vpow2.f32 %v759_v39  ;;  %v761_v43 = vmul.f32 1.442695, %v740_v40 }
 0x1e8   :  { %v2213_v44 = vpop.eup %2212  ;;  %2224 = vpow2.f32 %v765_v42  ;;  %v1965_v62 = vpop.f32.mrb[24].mxu1 }
 0x1e9   :  { %v2215_v7 = vpop.eup %2214  ;;  %v785_v46 = vadd.f32 1.0, %v2213_v44  ;;  %2226 = vpow2.f32 %v761_v43  ;;  %v2803_v2 = vadd.f32 %v1965_v62, %v2768_v34  ;;  %v704_v12 = vpop.f32.mrb[25].mxu1 }
 0x1ea   :  { %v2217_v48 = vpop.eup %2216  ;;  %v783_v22 = vadd.f32 1.0, %v2215_v7  ;;  %v2806_v26 = vadd.f32 %v2768_v34, %v704_v12  ;;  %v1966_v35 = vpop.f32.mrb[26].mxu1 }
 0x1eb   :  { %v2219_v41 = vpop.eup %2218  ;;  %2228 = vrcp.f32 %v785_v46  ;;  %v786_v49 = vadd.f32 1.0, %v2217_v48  ;;  %v745_v51 = vsub.f32 0.0, %v2803_v2  ;;  %v2810_v52 = vadd.f32 %v1966_v35, %v2768_v34  ;;  %v707_v54 = vpop.f32.mrb[27].mxu1 }
 0x1ec   :  { %2230 = vrcp.f32 %v783_v22  ;;  %v784_v55 = vadd.f32 1.0, %v2219_v41  ;;  %v743_v56 = vsub.f32 0.0, %v2806_v26  ;;  %v2814_v27 = vadd.f32 %v2768_v34, %v707_v54 }
 0x1ed   :  { %2232 = vrcp.f32 %v786_v49  ;;  %v771_v57 = vmul.f32 1.442695, %v745_v51  ;;  %v746_v58 = vsub.f32 0.0, %v2810_v52 }
 0x1ee   :  { %2234 = vrcp.f32 %v784_v55  ;;  %v767_v59 = vmul.f32 1.442695, %v743_v56  ;;  %v744_v60 = vsub.f32 0.0, %v2814_v27 }
 0x1ef   :  { %2236 = vpow2.f32 %v771_v57  ;;  %v773_v61 = vmul.f32 1.442695, %v746_v58  ;;  %v2142_v57 = vld [vmem:[%s3332_s12 + $0x10] sm:$0xff]  }
 0x1f0   :  { %v2221_v63 = vpop.eup %2220  ;;  %2238 = vpow2.f32 %v767_v59  ;;  %v769_v0 = vmul.f32 1.442695, %v744_v60  ;;  %v1969_v1 = vpop.f32.mrb[28].mxu1 }
 0x1f1   :  { %v2223_v3 = vpop.eup %2222  ;;  %v789_v4 = vadd.f32 1.0, %v2221_v63  ;;  %2240 = vpow2.f32 %v773_v61  ;;  %v2819_v5 = vadd.f32 %v1969_v1, %v2768_v34  ;;  %v720_v6 = vpop.f32.mrb[29].mxu1 }
 0x1f2   :  { %v2225_v8 = vpop.eup %2224  ;;  %v787_v37 = vadd.f32 1.0, %v2223_v3  ;;  %2242 = vpow2.f32 %v769_v0  ;;  %v2822_v10 = vadd.f32 %v2768_v34, %v720_v6  ;;  %v1970_v11 = vpop.f32.mrb[30].mxu1 }
 0x1f3   :  { %v2227_v14 = vpop.eup %2226  ;;  %2244 = vrcp.f32 %v789_v4  ;;  %v790_v15 = vadd.f32 1.0, %v2225_v8  ;;  %v749_v17 = vsub.f32 0.0, %v2819_v5  ;;  %v2826_v18 = vadd.f32 %v1970_v11, %v2768_v34  ;;  %v723_v19 = vpop.f32.mrb[31].mxu1  ;;  %v2143_v4 = vld [vmem:[%s3332_s12 + $0x18] sm:$0xff]  }
 0x1f4   :  { %2246 = vrcp.f32 %v787_v37  ;;  %v788_v20 = vadd.f32 1.0, %v2227_v14  ;;  %v747_v21 = vsub.f32 0.0, %v2822_v10  ;;  %v2830_v23 = vadd.f32 %v2768_v34, %v723_v19  ;;  %v2144_v37 = vld [vmem:[%s3332_s12 + $0x20] sm:$0xff]  }
 0x1f5   :  { %v2229_v24 = vpop.eup %2228  ;;  %2248 = vrcp.f32 %v790_v15  ;;  %v779_v50 = vmul.f32 1.442695, %v749_v17  ;;  %v750_v25 = vsub.f32 0.0, %v2826_v18 }
 0x1f6   :  { %v2231_v53 = vpop.eup %2230  ;;  %2250 = vrcp.f32 %v788_v20  ;;  %v775_v30 = vmul.f32 1.442695, %v747_v21  ;;  %v748_v32 = vsub.f32 0.0, %v2830_v23  ;;  %v833_v40 = vmul.f32 %v2229_v24, %v2771_v31  ;;  %v2145_v24 = vld [vmem:[%s3332_s12 + $0x28] sm:$0xff]  }
 0x1f7   :  { %v2233_v36 = vpop.eup %2232  ;;  %2252 = vpow2.f32 %v779_v50  ;;  %v781_v38 = vmul.f32 1.442695, %v750_v25  ;;  %v831_v44 = vmul.f32 %v2231_v53, %v2774_v9 }
 0x1f8   :  { %v2235_v39 = vpop.eup %2234  ;;  %v834_v42 = vmul.f32 %v2233_v36, %v2778_v13  ;;  %2254 = vpow2.f32 %v775_v30  ;;  %v777_v34 = vmul.f32 1.442695, %v748_v32  ;;  %v2141_v13 = vld [vmem:[%s3332_s12 + $0x8] sm:$0xff]  }
 0x1f9   :  { %v2237_v43 = vpop.eup %2236  ;;  %v832_v62 = vmul.f32 %v2235_v39, %v2782_v16  ;;  %2256 = vpow2.f32 %v781_v38  ;;  %v215_v38 = vpop.f32.mrb[0].mxu0 }
 0x1fa   :  { %v2239_v7 = vpop.eup %2238  ;;  %v848_v46 = vpack.c.bf16 %v834_v42, %v833_v40  ;;  %v793_v12 = vadd.f32 1.0, %v2237_v43  ;;  %2258 = vpow2.f32 %v777_v34  ;;  %v217_v39 = vpop.f32.mrb[1].mxu0 }
 0x1fb   :  { %v2241_v48 = vpop.eup %2240  ;;  %v791_v22 = vadd.f32 1.0, %v2239_v7  ;;  %v847_v35 = vpack.c.bf16 %v832_v62, %v831_v44  ;;  %v218_v40 = vpop.f32.mrb[2].mxu0 }
 0x1fc   :  { %v2243_v41 = vpop.eup %2242  ;;  %2260 = vrcp.f32 %v793_v12  ;;  %v794_v31 = vadd.f32 1.0, %v2241_v48 }
 0x1fd   :  { %v2245_v49 = vpop.eup %2244  ;;  %2262 = vrcp.f32 %v791_v22  ;;  %v792_v9 = vadd.f32 1.0, %v2243_v41  ;;  %1987 = vmatprep.mubr.bf16.mxu0 %v847_v35  ;;  %2019 = vmatprep.mubr.bf16.mxu1 %v847_v35 }
 0x1fe   :  { %v2247_v16 = vpop.eup %2246  ;;  %2264 = vrcp.f32 %v794_v31  ;;  %1988 = vmatmul.mubr.bf16.vlgmr.msra.gmra.mrb[16].mxu0 %v848_v46  ;;  %2020 = vmatmul.mubr.bf16.vlgmr.msra.gmra.mrb[32].mxu1 %v848_v46  ;;  %v837_v55 = vmul.f32 %v2245_v49, %v2787_v45 }
 0x1ff   :  { %v2249_v51 = vpop.eup %2248  ;;  %2266 = vrcp.f32 %v792_v9  ;;  %2036 = vmatpush3.bf16.msra.mxu0 %v2761_v29  ;;  %2075 = vmatpush3.bf16.msra.mxu1 %v2761_v29  ;;  %v835_v59 = vmul.f32 %v2247_v16, %v2790_v47 }
 0x200   :  { %v2251_v54 = vpop.eup %2250  ;;  %v838_v56 = vmul.f32 %v2249_v51, %v2794_v28  ;;  %2037 = vmatprep.subr.bf16.mxu0 %v2141_v13  ;;  %2068 = vmatprep.subr.bf16.mxu1 %v2141_v13 }
 0x201   :  { %v2253_v58 = vpop.eup %2252  ;;  %v836_v60 = vmul.f32 %v2251_v54, %v2798_v33  ;;  %v2146_v54 = vld [vmem:[%s3332_s12 + $0x30] sm:$0xff]  }
 0x202   :  { %v2255_v61 = vpop.eup %2254  ;;  %v797_v63 = vadd.f32 1.0, %v2253_v58  ;;  %v850_v0 = vpack.c.bf16 %v838_v56, %v837_v55  ;;  %v2147_v55 = vld [vmem:[%s3332_s12 + $0x38] sm:$0xff]   ;;  %v2903_v56 = vld [vmem:[%s3336_s9] ss:$0 sm:$0xff] }
 0x203   :  { %v2257_v29 = vpop.eup %2256  ;;  %v795_v1 = vadd.f32 1.0, %v2255_v61  ;;  %v849_v3 = vpack.c.bf16 %v836_v60, %v835_v59  ;;  %2038 = vmatpush3.bf16.msra.mxu0 %v2141_v13  ;;  %2076 = vmatpush3.bf16.msra.mxu1 %v2141_v13 }
 0x204   :  { %v2259_v45 = vpop.eup %2258  ;;  %2268 = vrcp.f32 %v797_v63  ;;  %v798_v28 = vadd.f32 1.0, %v2257_v29  ;;  %2039 = vmatprep.subr.bf16.mxu0 %v2142_v57  ;;  %2069 = vmatprep.subr.bf16.mxu1 %v2142_v57 }
 0x205   :  { %2270 = vrcp.f32 %v795_v1  ;;  %v796_v47 = vadd.f32 1.0, %v2259_v45  ;;  %1991 = vmatprep.mubr.bf16.mxu0 %v849_v3  ;;  %2023 = vmatprep.mubr.bf16.mxu1 %v849_v3 }
 0x206   :  { %v2261_v33 = vpop.eup %2260  ;;  %2272 = vrcp.f32 %v798_v28  ;;  %1992 = vmatmul.mubr.bf16.gmra.mrb[20].mxu0 %v850_v0  ;;  %2024 = vmatmul.mubr.bf16.gmra.mrb[36].mxu1 %v850_v0 }
 0x207   :  { %v2263_v6 = vpop.eup %2262  ;;  %2274 = vrcp.f32 %v796_v47  ;;  %2040 = vmatpush3.bf16.msra.mxu0 %v2142_v57  ;;  %2077 = vmatpush3.bf16.msra.mxu1 %v2142_v57  ;;  %v841_v14 = vmul.f32 %v2261_v33, %v2803_v2 }
 0x208   :  { %v2265_v8 = vpop.eup %2264  ;;  %2041 = vmatprep.subr.bf16.mxu0 %v2143_v4  ;;  %2070 = vmatprep.subr.bf16.mxu1 %v2143_v4  ;;  %v839_v17 = vmul.f32 %v2263_v6, %v2806_v26 }
 0x209   :  { %v2267_v11 = vpop.eup %2266  ;;  %v842_v15 = vmul.f32 %v2265_v8, %v2810_v52 }
 0x20a   :  { %v840_v19 = vmul.f32 %v2267_v11, %v2814_v27 }
 0x20b   :  { %v852_v20 = vpack.c.bf16 %v842_v15, %v841_v14  ;;  %2042 = vmatpush3.bf16.msra.mxu0 %v2143_v4  ;;  %2078 = vmatpush3.bf16.msra.mxu1 %v2143_v4 }
 0x20c   :  { %v851_v21 = vpack.c.bf16 %v840_v19, %v839_v17  ;;  %2043 = vmatprep.subr.bf16.mxu0 %v2144_v37  ;;  %2071 = vmatprep.subr.bf16.mxu1 %v2144_v37 }
 0x20e   :  { %v2269_v50 = vpop.eup %2268  ;;  %1995 = vmatprep.mubr.bf16.mxu0 %v851_v21  ;;  %2027 = vmatprep.mubr.bf16.mxu1 %v851_v21 }
 0x20f   :  { %v2271_v2 = vpop.eup %2270  ;;  %1996 = vmatmul.mubr.bf16.gmra.mrb[24].mxu0 %v852_v20  ;;  %2028 = vmatmul.mubr.bf16.gmra.mrb[40].mxu1 %v852_v20  ;;  %v845_v27 = vmul.f32 %v2269_v50, %v2819_v5  ;;  %v1769_v5 = vld [vmem:[%s3334_s2] ss:$0 sm:$0xff] }
 0x210   :  { %v2273_v52 = vpop.eup %2272  ;;  %2044 = vmatpush3.bf16.msra.mxu0 %v2144_v37  ;;  %2079 = vmatpush3.bf16.msra.mxu1 %v2144_v37  ;;  %v843_v53 = vmul.f32 %v2271_v2, %v2822_v10  ;;  %v219_v10 = vadd.f32 %v1769_v5, %v218_v40 }
 0x211   :  { %v2275_v26 = vpop.eup %2274  ;;  %v846_v25 = vmul.f32 %v2273_v52, %v2826_v18  ;;  %2045 = vmatprep.subr.bf16.mxu0 %v2145_v24  ;;  %2072 = vmatprep.subr.bf16.mxu1 %v2145_v24  ;;  %v216_v18 = vadd.f32 %v1769_v5, %v215_v38 }
 0x212   :  { %v844_v30 = vmul.f32 %v2275_v26, %v2830_v23  ;;  %v220_v23 = vpop.f32.mrb[3].mxu0  ;;  %1742 = vst [vmem:[%s3335_s13 + $0x8] sm:$0xff] %v219_v10 }
 0x213   :  { %v854_v32 = vpack.c.bf16 %v846_v25, %v845_v27  ;;  %1741 = vst [vmem:[%s3335_s13] sm:$0xff] %v216_v18  ;;  %v223_v42 = vpop.f32.mrb[4].mxu0 }
 0x214   :  { %v853_v36 = vpack.c.bf16 %v844_v30, %v843_v53  ;;  %2046 = vmatpush3.bf16.msra.mxu0 %v2145_v24  ;;  %2080 = vmatpush3.bf16.msra.mxu1 %v2145_v24  ;;  %v224_v34 = vadd.f32 %v1769_v5, %v223_v42  ;;  %v225_v43 = vpop.f32.mrb[5].mxu0 }
 0x215   :  { %v226_v44 = vpop.f32.mrb[6].mxu0  ;;  %2047 = vmatprep.subr.bf16.mxu0 %v2146_v54  ;;  %2073 = vmatprep.subr.bf16.mxu1 %v2146_v54 }
 0x216   :  { %1999 = vmatprep.mubr.bf16.mxu0 %v853_v36  ;;  %2031 = vmatprep.mubr.bf16.mxu1 %v853_v36  ;;  %1743 = vst [vmem:[%s3335_s13 + $0x10] sm:$0xff] %v224_v34  ;;  %v227_v62 = vadd.f32 %v1769_v5, %v226_v44  ;;  %v228_v7 = vpop.f32.mrb[7].mxu0 }
 0x217   :  { %2000 = vmatmul.mubr.bf16.gmra.mrb[28].mxu0 %v854_v32  ;;  %2032 = vmatmul.mubr.bf16.gmra.mrb[44].mxu1 %v854_v32  ;;  %v231_v46 = vpop.f32.mrb[8].mxu0 }
 0x218   :  { %1744 = vst [vmem:[%s3335_s13 + $0x18] sm:$0xff] %v227_v62  ;;  %v232_v12 = vadd.f32 %v1769_v5, %v231_v46  ;;  %v233_v48 = vpop.f32.mrb[9].mxu0  ;;  %2048 = vmatpush3.bf16.msra.mxu0 %v2146_v54  ;;  %2081 = vmatpush3.bf16.msra.mxu1 %v2146_v54 }
 0x219   :  { %v234_v22 = vpop.f32.mrb[10].mxu0  ;;  %2049 = vmatprep.subr.bf16.mxu0 %v2147_v55  ;;  %2074 = vmatprep.subr.bf16.mxu1 %v2147_v55 }
 0x21a   :  { %1745 = vst [vmem:[%s3335_s13 + $0x20] sm:$0xff] %v232_v12  ;;  %v235_v35 = vadd.f32 %v1769_v5, %v234_v22  ;;  %v236_v41 = vpop.f32.mrb[11].mxu0 }
 0x21b   :  { %v239_v31 = vpop.f32.mrb[12].mxu0 }
 0x21c   :  { %1746 = vst [vmem:[%s3335_s13 + $0x28] sm:$0xff] %v235_v35  ;;  %v240_v13 = vadd.f32 %v1769_v5, %v239_v31  ;;  %v241_v49 = vpop.f32.mrb[13].mxu0  ;;  %2050 = vmatpush3.bf16.msra.mxu0 %v2147_v55  ;;  %2082 = vmatpush3.bf16.msra.mxu1 %v2147_v55 }
 0x21d   :  { %v242_v9 = vpop.f32.mrb[14].mxu0 }
 0x21e   :  { %1747 = vst [vmem:[%s3335_s13 + $0x30] sm:$0xff] %v240_v13  ;;  %v243_v16 = vadd.f32 %v1769_v5, %v242_v9  ;;  %v244_v51 = vpop.f32.mrb[15].mxu0 }
 0x220   :  { %1748 = vst [vmem:[%s3335_s13 + $0x38] sm:$0xff] %v243_v16 }
 0x2d1   :  { %v1989_v57 = vpop.f32.mrb[16].mxu0  ;;  %v2905_v58 = vpop.f32.mrb[32].mxu1 }
 0x2d2   :  { %v960_v59 = vpop.f32.mrb[17].mxu0  ;;  %v2907_v60 = vpop.f32.mrb[33].mxu1  ;;  %v2910_v61 = vadd.f32 %v1989_v57, %v2903_v56 }
 0x2d3   :  { %v1990_v63 = vpop.f32.mrb[18].mxu0  ;;  %v2912_v0 = vpop.f32.mrb[34].mxu1  ;;  %v2932_v17 = vadd.f32 %v2903_v56, %v960_v59 }
 0x2d4   :  { %v963_v29 = vpop.f32.mrb[19].mxu0  ;;  %v2914_v1 = vpop.f32.mrb[35].mxu1  ;;  %v2917_v3 = vadd.f32 %v1990_v63, %v2903_v56  ;;  %v1193_v45 = vmul.f32 %v2910_v61, %v2910_v61 }
 0x2d5   :  { %v2935_v19 = vadd.f32 %v2903_v56, %v963_v29  ;;  %v1191_v52 = vmul.f32 %v2932_v17, %v2932_v17 }
 0x2d6   :  { %v1194_v28 = vmul.f32 %v2917_v3, %v2917_v3 }
 0x2d7   :  { %v1192_v26 = vmul.f32 %v2935_v19, %v2935_v19 }
 0x2d8   :  { %v1208_v4 = vpack.c.bf16 %v1194_v28, %v1193_v45 }
 0x2d9   :  { %v1993_v47 = vpop.f32.mrb[20].mxu0  ;;  %v2923_v33 = vpop.f32.mrb[36].mxu1  ;;  %v1207_v30 = vpack.c.bf16 %v1192_v26, %v1191_v52  ;;  %v1537_v52 = vand.u32 2147483647, %v2935_v19 }
 0x2da   :  { %v976_v6 = vpop.f32.mrb[21].mxu0  ;;  %v2925_v8 = vpop.f32.mrb[37].mxu1  ;;  %v2968_v62 = vadd.f32 %v1993_v47, %v2903_v56 }
 0x2db   :  { %v1994_v37 = vpop.f32.mrb[22].mxu0  ;;  %v2927_v11 = vpop.f32.mrb[38].mxu1  ;;  %2051 = vmatprep.mubr.bf16.mxu0 %v1207_v30  ;;  %v2961_v42 = vadd.f32 %v2903_v56, %v976_v6 }
 0x2dc   :  { %v979_v14 = vpop.f32.mrb[23].mxu0  ;;  %v2929_v15 = vpop.f32.mrb[39].mxu1  ;;  %2052 = vmatmul.mubr.bf16.vlgmr.msra.gmra.mrb[32].mxu0 %v1208_v4  ;;  %v2971_v7 = vadd.f32 %v1994_v37, %v2903_v56  ;;  %v1197_v46 = vmul.f32 %v2968_v62, %v2968_v62  ;;  %v1536_v37 = vand.u32 2147483647, %v2932_v17 }
 0x2dd   :  { %v2956_v40 = vadd.f32 %v2903_v56, %v979_v14  ;;  %v1195_v43 = vmul.f32 %v2961_v42, %v2961_v42  ;;  %v1539_v14 = vand.u32 2147483647, %v2917_v3 }
 0x2de   :  { %v1198_v12 = vmul.f32 %v2971_v7, %v2971_v7 }
 0x2df   :  { %v1196_v34 = vmul.f32 %v2956_v40, %v2956_v40 }
 0x2e0   :  { %v1210_v48 = vpack.c.bf16 %v1198_v12, %v1197_v46  ;;  %v1430_v12 = vsub.f32 0.0, %v2968_v62 }
 0x2e1   :  { %v1209_v44 = vpack.c.bf16 %v1196_v34, %v1195_v43  ;;  %v1427_v34 = vsub.f32 0.0, %v2917_v3 }
 0x2e2   :  { %v1997_v20 = vpop.f32.mrb[24].mxu0  ;;  %v2937_v21 = vpop.f32.mrb[40].mxu1 }
 0x2e3   :  { %v992_v24 = vpop.f32.mrb[25].mxu0  ;;  %v2939_v50 = vpop.f32.mrb[41].mxu1  ;;  %2055 = vmatprep.mubr.bf16.mxu0 %v1209_v44  ;;  %v3001_v57 = vadd.f32 %v1997_v20, %v2903_v56  ;;  %v1425_v44 = vsub.f32 0.0, %v2935_v19 }
 0x2e4   :  { %v1998_v2 = vpop.f32.mrb[26].mxu0  ;;  %v2945_v27 = vpop.f32.mrb[42].mxu1  ;;  %2056 = vmatmul.mubr.bf16.gmra.mrb[36].mxu0 %v1210_v48  ;;  %v2988_v13 = vadd.f32 %v2903_v56, %v992_v24  ;;  %v1552_v24 = vsub.f32 0.0, %v1536_v37  ;;  %v1446_v48 = vmul.f32 1.442695, %v1427_v34 }
 0x2e5   :  { %v995_v25 = vpop.f32.mrb[27].mxu0  ;;  %v2947_v53 = vpop.f32.mrb[43].mxu1  ;;  %v2998_v55 = vadd.f32 %v1998_v2, %v2903_v56  ;;  %v1201_v45 = vmul.f32 %v3001_v57, %v3001_v57  ;;  %v1555_v2 = vsub.f32 0.0, %v1539_v14  ;;  %v1540_v37 = vand.u32 2147483647, %v2961_v42 }
 0x2e6   :  { %v2991_v49 = vadd.f32 %v2903_v56, %v995_v25  ;;  %v1199_v16 = vmul.f32 %v2988_v13, %v2988_v13  ;;  %v1568_v25 = vmul.f32 1.442695, %v1552_v24  ;;  %v1543_v24 = vand.u32 2147483647, %v2971_v7 }
 0x2e7   :  { %v1202_v29 = vmul.f32 %v2998_v55, %v2998_v55  ;;  %v1574_v30 = vmul.f32 1.442695, %v1555_v2 }
 0x2e8   :  { %v1200_v51 = vmul.f32 %v2991_v49, %v2991_v49 }
 0x2e9   :  { %v1212_v47 = vpack.c.bf16 %v1202_v29, %v1201_v45 }
 0x2ea   :  { %v2001_v32 = vpop.f32.mrb[28].mxu0  ;;  %v2949_v36 = vpop.f32.mrb[44].mxu1  ;;  %v1211_v54 = vpack.c.bf16 %v1200_v51, %v1199_v16  ;;  %v1442_v16 = vmul.f32 1.442695, %v1425_v44 }
 0x2eb   :  { %v1008_v5 = vpop.f32.mrb[29].mxu0  ;;  %v2951_v38 = vpop.f32.mrb[45].mxu1  ;;  %v2978_v22 = vadd.f32 %v2001_v32, %v2903_v56  ;;  %v1553_v32 = vsub.f32 0.0, %v1537_v52 }
 0x2ec   :  { %v2002_v18 = vpop.f32.mrb[30].mxu0  ;;  %v2953_v39 = vpop.f32.mrb[46].mxu1  ;;  %v3004_v59 = vadd.f32 %v2903_v56, %v1008_v5  ;;  %2059 = vmatprep.mubr.bf16.mxu0 %v1211_v54  ;;  %v1426_v5 = vsub.f32 0.0, %v2910_v61  ;;  %v1452_v54 = vmul.f32 1.442695, %v1430_v12 }
 0x2ed   :  { %v1011_v10 = vpop.f32.mrb[31].mxu0  ;;  %v2958_v23 = vpop.f32.mrb[47].mxu1  ;;  %v2981_v35 = vadd.f32 %v2002_v18, %v2903_v56  ;;  %v1205_v41 = vmul.f32 %v2978_v22, %v2978_v22  ;;  %2060 = vmatmul.mubr.bf16.gmra.mrb[40].mxu0 %v1212_v47  ;;  %v1570_v18 = vmul.f32 1.442695, %v1553_v32 }
 0x2ee   :  { %v3007_v63 = vadd.f32 %v2903_v56, %v1011_v10  ;;  %v1203_v28 = vmul.f32 %v3004_v59, %v3004_v59  ;;  %v1538_v56 = vand.u32 2147483647, %v2910_v61  ;;  %v1424_v10 = vsub.f32 0.0, %v2932_v17 }
 0x2ef   :  { %v1206_v31 = vmul.f32 %v2981_v35, %v2981_v35  ;;  %v1444_v43 = vmul.f32 1.442695, %v1426_v5 }
 0x2f0   :  { %v1204_v4 = vmul.f32 %v3007_v63, %v3007_v63  ;;  %v1554_v20 = vsub.f32 0.0, %v1538_v56  ;;  %v1440_v46 = vmul.f32 1.442695, %v1424_v10  ;;  %v1428_v56 = vsub.f32 0.0, %v2961_v42 }
 0x2f1   :  { %v1214_v9 = vpack.c.bf16 %v1206_v31, %v1205_v41  ;;  %v1542_v41 = vand.u32 2147483647, %v2968_v62  ;;  %v1559_v10 = vsub.f32 0.0, %v1543_v24 }
 0x2f2   :  { %v1213_v6 = vpack.c.bf16 %v1204_v4, %v1203_v28  ;;  %v1572_v26 = vmul.f32 1.442695, %v1554_v20 }
 0x2f3   :  { %v1558_v45 = vsub.f32 0.0, %v1542_v41 }
 0x2f4   :  { %2063 = vmatprep.mubr.bf16.mxu1 %v1213_v6  ;;  %2276 = vpow2.f32 %v1572_v26  ;;  %v1680_v6 = vlaneseq  ;;  %v1448_v26 = vmul.f32 1.442695, %v1428_v56 }
 0x2f5   :  { %2064 = vmatmul.mubr.bf16.vlgmr.msra.gmra.mrb[48].mxu1 %v1214_v9  ;;  %2278 = vpow2.f32 %v1568_v25  ;;  %v1580_v14 = vmul.f32 1.442695, %v1558_v45  ;;  %v1556_v25 = vsub.f32 0.0, %v1540_v37  ;;  %v1546_v37 = vand.u32 2147483647, %v3001_v57 }
 0x2f6   :  { %2280 = vpow2.f32 %v1574_v30  ;;  %v3030_v52 = vand.u32 127, %v1680_v6  ;;  %v1541_v30 = vand.u32 2147483647, %v2956_v40  ;;  %v1522_v6 = vmax.f32 %v2910_v61, 0.0 }
 0x2f7   :  { %2282 = vpow2.f32 %v1570_v18  ;;  %v1576_v34 = vmul.f32 1.442695, %v1556_v25 }
 0x2f8   :  { %2284 = vpow2.f32 %v1444_v43  ;;  %vm1691_vm2 = vcmp.eq.s32.totalorder %v3030_v52, 7  ;;  %v1431_v43 = vsub.f32 0.0, %v2971_v7  ;;  %vm1684_vm3 = vcmp.ge.s32.totalorder %v3030_v52, 11 }
 0x2f9   :  { %2286 = vpow2.f32 %v1440_v46  ;;  %v3038_v46 = vld [vmem:[%s3337_s11] ss:$0 sm:$0xff]  ;;  %vm1685_vm4 = vcmp.lt.s32.totalorder %v3030_v52, 14  ;;  %vm1688_vm5 = vcmp.ge.s32.totalorder %v3030_v52, 4  ;;  %vm1689_vm6 = vcmp.lt.s32.totalorder %v3030_v52, 7 }
 0x2fa   :  { %2288 = vpow2.f32 %v1446_v48  ;;  %v1557_v48 = vsub.f32 0.0, %v1541_v30  ;;  %v3046_v45 = vadd.f32 %v2905_v58, %v3038_v46  ;;  %v1520_v58 = vmax.f32 %v2932_v17, 0.0  ;;  %vm3073_vm8 = vmand %vm1684_vm3, %vm1685_vm4 }
 0x2fb   :  { %2290 = vpow2.f32 %v1442_v16  ;;  %v2437_v16 = vmov 0.0   ;;  %vm1683_vm7 = vcmp.eq.s32.totalorder %v3030_v52, 3  ;;  %v1521_v30 = vmax.f32 %v2935_v19, 0.0  ;;  %vm3081_vm9 = vmand %vm1688_vm5, %vm1689_vm6 }
 0x2fc   :  { %2292 = vpow2.f32 %v1452_v54  ;;  %v1582_v54 = vmul.f32 1.442695, %v1559_v10  ;;  %v1578_v56 = vmul.f32 1.442695, %v1557_v48  ;;  %vm3092_vm10 = vmor %vm1683_vm7, %vm3073_vm8  ;;  %vm1682_vm11 = vcmp.lt.s32.totalorder %v3030_v52, 3 }
 0x2fe   :  { %v2277_v31 = vpop.eup %2276 }
 0x2ff   :  { %v2279_v9 = vpop.eup %2278  ;;  %v1602_v29 = vadd.f32 1.0, %v2277_v31 }
 0x300   :  { %v2281_v51 = vpop.eup %2280  ;;  %v1600_v28 = vadd.f32 1.0, %v2279_v9 }
 0x301   :  { %v1603_v4 = vadd.f32 1.0, %v2281_v51  ;;  %v2283_v47 = vpop.eup %2282  ;;  %2294 = vlog2.f32 %v1602_v29  ;;  %v3040_v51 = vsel %vm1691_vm2, 1.0, %v2437_v16 }
 0x302   :  { %2296 = vlog2.f32 %v1600_v28  ;;  %v1601_v20 = vadd.f32 1.0, %v2283_v47  ;;  %v2285_v2 = vpop.eup %2284  ;;  %v3050_v28 = vadd.f32 %v3038_v46, %v2907_v60  ;;  %v3059_v60 = vadd.f32 %v2912_v0, %v3038_v46 }
 0x303   :  { %2298 = vlog2.f32 %v1603_v4  ;;  %v2287_v32 = vpop.eup %2286  ;;  %v1474_v18 = vadd.f32 1.0, %v2285_v2  ;;  %v1454_v4 = vmul.f32 1.442695, %v1431_v43  ;;  %v1434_v0 = vsub.f32 0.0, %v3001_v57 }
 0x304   :  { %2300 = vpow2.f32 %v1580_v14  ;;  %v2289_v5 = vpop.eup %2288  ;;  %v1472_v12 = vadd.f32 1.0, %v2287_v32  ;;  %v1429_v32 = vsub.f32 0.0, %v2956_v40  ;;  %v1544_v43 = vand.u32 2147483647, %v2988_v13 }
 0x305   :  { %2302 = vlog2.f32 %v1601_v20  ;;  %v2291_v44 = vpop.eup %2290  ;;  %v1475_v31 = vadd.f32 1.0, %v2289_v5  ;;  %v1562_v5 = vsub.f32 0.0, %v1546_v37 }
 0x306   :  { %2304 = vpow2.f32 %v1448_v26  ;;  %v2293_v41 = vpop.eup %2292  ;;  %v1473_v14 = vadd.f32 1.0, %v2291_v44  ;;  %v1523_v26 = vmax.f32 %v2917_v3, 0.0 }
 0x307   :  { %2306 = vrcp.f32 %v1474_v18  ;;  %v1478_v61 = vadd.f32 1.0, %v2293_v41 }
 0x308   :  { %2308 = vpow2.f32 %v1576_v34 }
 0x309   :  { %2310 = vrcp.f32 %v1472_v12 }
 0x30a   :  { %2312 = vrcp.f32 %v1475_v31 }
 0x30b   :  { %v2295_v9 = vpop.eup %2294  ;;  %2314 = vpow2.f32 %v1582_v54 }
 0x30c   :  { %v2297_v29 = vpop.eup %2296  ;;  %v1621_v24 = vmul.f32 0.6931472, %v2295_v9  ;;  %2316 = vpow2.f32 %v1454_v4 }
 0x30d   :  { %v2299_v47 = vpop.eup %2298  ;;  %v1617_v2 = vmul.f32 0.6931472, %v2297_v29  ;;  %2318 = vpow2.f32 %v1578_v56 }
 0x30e   :  { %v2301_v20 = vpop.eup %2300  ;;  %v1623_v25 = vmul.f32 0.6931472, %v2299_v47  ;;  %2320 = vrcp.f32 %v1473_v14  ;;  %v1650_v3 = vadd.f32 %v1621_v24, %v1522_v6  ;;  %v1450_v47 = vmul.f32 1.442695, %v1429_v32 }
 0x30f   :  { %v2303_v17 = vpop.eup %2302  ;;  %v1606_v34 = vadd.f32 1.0, %v2301_v20  ;;  %v1648_v48 = vadd.f32 %v1617_v2, %v1520_v58  ;;  %2322 = vrcp.f32 %v1478_v61  ;;  %v1432_v14 = vsub.f32 0.0, %v2988_v13 }
 0x310   :  { %v2305_v10 = vpop.eup %2304  ;;  %v1651_v31 = vadd.f32 %v1623_v25, %v1523_v26  ;;  %v1619_v9 = vmul.f32 0.6931472, %v2303_v17  ;;  %v1560_v20 = vsub.f32 0.0, %v1544_v43  ;;  %v1435_v6 = vsub.f32 0.0, %v2998_v55 }
 0x311   :  { %v2307_v29 = vpop.eup %2306  ;;  %v1476_v4 = vadd.f32 1.0, %v2305_v10  ;;  %v1666_v24 = vmul.f32 0.1, %v1650_v3  ;;  %v1664_v61 = vmul.f32 0.1, %v1648_v48 }
 0x312   :  { %v2309_v37 = vpop.eup %2308  ;;  %v1460_v26 = vmul.f32 1.442695, %v1434_v0  ;;  %v1667_v32 = vmul.f32 0.1, %v1651_v31  ;;  %v1588_v10 = vmul.f32 1.442695, %v1562_v5 }
 0x313   :  { %v2311_v58 = vpop.eup %2310  ;;  %v1604_v0 = vadd.f32 1.0, %v2309_v37  ;;  %v1456_v48 = vmul.f32 1.442695, %v1432_v14  ;;  %v1693_v5 = vsel %vm3081_vm9, %v1664_v61, %v3040_v51  ;;  %v1550_v14 = vand.u32 2147483647, %v2978_v22 }
 0x314   :  { %v2313_v25 = vpop.eup %2312 }
 0x315   :  { %v2315_v43 = vpop.eup %2314 }
 0x316   :  { %v2317_v3 = vpop.eup %2316 }
 0x3af   :  { %v2053_v18 = vpop.f32.mrb[32].mxu0 }
 0x3b0   :  { %v1378_v44 = vmax.f32 %v2053_v18, 1e-24  ;;  %v1313_v12 = vpop.f32.mrb[33].mxu0  ;;  %v1649_v18 = vadd.f32 %v1619_v9, %v1521_v30  ;;  %v1696_v9 = vsel %vm3081_vm9, %v1667_v32, %v3040_v51  ;;  %v1433_v32 = vsub.f32 0.0, %v2991_v49 }
 0x3b1   :  { %v1376_v19 = vmax.f32 %v1313_v12, 1e-24  ;;  %v2054_v41 = vpop.f32.mrb[34].mxu0  ;;  %v1547_v12 = vand.u32 2147483647, %v2998_v55 }
 0x3b2   :  { %2324 = vrsqrt.f32 %v1378_v44  ;;  %v1379_v16 = vmax.f32 %v2054_v41, 1e-24  ;;  %v1316_v54 = vpop.f32.mrb[35].mxu0  ;;  %v1132_v44 = vadd.f32 %v3038_v46, %v2914_v1  ;;  %v1462_v41 = vmul.f32 1.442695, %v1435_v6 }
 0x3b3   :  { %2326 = vrsqrt.f32 %v1376_v19  ;;  %v1377_v56 = vmax.f32 %v1316_v54, 1e-24  ;;  %v1584_v19 = vmul.f32 1.442695, %v1560_v20  ;;  %v1695_v1 = vsel %vm3081_vm9, %v1666_v24, %v3040_v51 }
 0x3b4   :  { %2328 = vrsqrt.f32 %v1379_v16  ;;  %v2319_v16 = vpop.eup %2318  ;;  %v1665_v54 = vmul.f32 0.1, %v1649_v18  ;;  %v1563_v37 = vsub.f32 0.0, %v1547_v12  ;;  %v1711_v6 = vsel %vm3092_vm10, %v2307_v29, %v1695_v1 }
 0x3b5   :  { %2330 = vrsqrt.f32 %v1377_v56  ;;  %v2321_v31 = vpop.eup %2320  ;;  %v1479_v56 = vadd.f32 1.0, %v2317_v3  ;;  %v1709_v24 = vsel %vm3092_vm10, %v2311_v58, %v1693_v5  ;;  %v1605_v2 = vadd.f32 1.0, %v2319_v16 }
 0x3b6   :  { %2332 = vlog2.f32 %v1606_v34  ;;  %v1545_v34 = vand.u32 2147483647, %v2991_v49  ;;  %v1694_v29 = vsel %vm3081_vm9, %v1665_v54, %v3040_v51  ;;  %v1548_v58 = vand.u32 2147483647, %v3004_v59 }
 0x3b7   :  { %2334 = vrcp.f32 %v1476_v4  ;;  %v1607_v4 = vadd.f32 1.0, %v2315_v43  ;;  %v1566_v3 = vsub.f32 0.0, %v1550_v14  ;;  %v1551_v16 = vand.u32 2147483647, %v2981_v35 }
 0x3b8   :  { %2336 = vpow2.f32 %v1450_v47  ;;  %v3106_v47 = vpop.eup %2322  ;;  %v1561_v18 = vsub.f32 0.0, %v1545_v34  ;;  %v1549_v5 = vand.u32 2147483647, %v3007_v63  ;;  %v1710_v54 = vsel %vm3092_vm10, %v2321_v31, %v1694_v29 }
 0x3b9   :  { %2338 = vpow2.f32 %v1460_v26  ;;  %v1712_v26 = vsel %vm3092_vm10, %v2313_v25, %v1696_v9  ;;  %v1596_v31 = vmul.f32 1.442695, %v1566_v3  ;;  %v1526_v29 = vmax.f32 %v2968_v62, 0.0  ;;  %v2057_v3 = vpop.f32.mrb[36].mxu0 }
 0x3ba   :  { %2340 = vpow2.f32 %v1588_v10 }
 0x3bb   :  { %2342 = vlog2.f32 %v1604_v0 }
 0x3bc   :  { %v2325_v20 = vpop.eup %2324  ;;  %2344 = vlog2.f32 %v1607_v4  ;;  %v1590_v4 = vmul.f32 1.442695, %v1563_v37  ;;  %v1567_v37 = vsub.f32 0.0, %v1551_v16 }
 0x3bd   :  { %v2327_v61 = vpop.eup %2326  ;;  %v1410_v10 = vmul.f32 %v2325_v20, %v3046_v45  ;;  %2346 = vlog2.f32 %v1605_v2  ;;  %v1586_v20 = vmul.f32 1.442695, %v1561_v18  ;;  %v1565_v2 = vsub.f32 0.0, %v1549_v5 }
 0x3be   :  { %v2329_v43 = vpop.eup %2328  ;;  %v1408_v0 = vmul.f32 %v2327_v61, %v3050_v28  ;;  %2348 = vpow2.f32 %v1456_v48  ;;  %v1382_v5 = vmax.f32 %v2057_v3, 1e-24 }
 0x3bf   :  { %v2331_v12 = vpop.eup %2330  ;;  %v1727_v25 = vsel %vm1682_vm11, %v1410_v10, %v1711_v6  ;;  %v1411_v1 = vmul.f32 %v2329_v43, %v3059_v60  ;;  %2350 = vpow2.f32 %v1584_v19  ;;  %v1564_v6 = vsub.f32 0.0, %v1548_v58 }
 0x3c0   :  { %v2333_v45 = vpop.eup %2332  ;;  %1751 = vst [vmem:[%s3335_s13 + $0x50] sm:$0xff] %v1727_v25  ;;  %v1725_v28 = vsel %vm1682_vm11, %v1408_v0, %v1709_v24  ;;  %v1409_v34 = vmul.f32 %v2331_v12, %v1132_v44  ;;  %2352 = vrcp.f32 %v1479_v56  ;;  %v1458_v19 = vmul.f32 1.442695, %v1433_v32 }
 0x3c1   :  { %v3133_v9 = vpop.eup %2334  ;;  %1749 = vst [vmem:[%s3335_s13 + $0x40] sm:$0xff] %v1725_v28  ;;  %v1728_v60 = vsel %vm1682_vm11, %v1411_v1, %v1712_v26  ;;  %2354 = vpow2.f32 %v1462_v41  ;;  %v1592_v18 = vmul.f32 1.442695, %v1564_v6  ;;  %v1598_v10 = vmul.f32 1.442695, %v1567_v37  ;;  %v1329_v28 = vpop.f32.mrb[37].mxu0 }
 0x3c2   :  { %v2337_v14 = vpop.eup %2336  ;;  %1752 = vst [vmem:[%s3335_s13 + $0x58] sm:$0xff] %v1728_v60  ;;  %v1726_v44 = vsel %vm1682_vm11, %v1409_v34, %v1710_v54  ;;  %2356 = vpow2.f32 %v1590_v4  ;;  %v1594_v56 = vmul.f32 1.442695, %v1565_v2  ;;  %v1524_v58 = vmax.f32 %v2961_v42, 0.0  ;;  %v2058_v54 = vpop.f32.mrb[38].mxu0 }
 0x3c3   :  { %v3147_v48 = vpop.eup %2338  ;;  %1750 = vst [vmem:[%s3335_s13 + $0x48] sm:$0xff] %v1726_v44  ;;  %v1477_v26 = vadd.f32 1.0, %v2337_v14  ;;  %2358 = vpow2.f32 %v1586_v20  ;;  %v1629_v12 = vmul.f32 0.6931472, %v2333_v45  ;;  %v1527_v41 = vmax.f32 %v2971_v7, 0.0  ;;  %v1332_v20 = vpop.f32.mrb[39].mxu0 }
 0x3c4   :  { %v2341_v24 = vpop.eup %2340  ;;  %2360 = vpow2.f32 %v1596_v31  ;;  %v1438_v32 = vsub.f32 0.0, %v2978_v22  ;;  %v1436_v1 = vsub.f32 0.0, %v3004_v59  ;;  %v1439_v42 = vsub.f32 0.0, %v2981_v35 }
 0x3c5   :  { %v2343_v61 = vpop.eup %2342  ;;  %2362 = vpow2.f32 %v1458_v19  ;;  %v1380_v45 = vmax.f32 %v1329_v28, 1e-24  ;;  %v1610_v60 = vadd.f32 1.0, %v2341_v24  ;;  %v1383_v14 = vmax.f32 %v2058_v54, 1e-24 }
 0x3c6   :  { %v2345_v43 = vpop.eup %2344  ;;  %2364 = vrcp.f32 %v1477_v26  ;;  %v1625_v25 = vmul.f32 0.6931472, %v2343_v61  ;;  %v1654_v44 = vadd.f32 %v1629_v12, %v1526_v29  ;;  %v1468_v31 = vmul.f32 1.442695, %v1438_v32 }
 0x3c7   :  { %v2347_v0 = vpop.eup %2346  ;;  %2366 = vpow2.f32 %v1592_v18  ;;  %v1631_v34 = vmul.f32 0.6931472, %v2345_v43  ;;  %v1381_v37 = vmax.f32 %v1332_v20, 1e-24  ;;  %v1525_v61 = vmax.f32 %v2956_v40, 0.0 }
 0x3c8   :  { %v3156_v16 = vpop.eup %2348  ;;  %2368 = vpow2.f32 %v1598_v10  ;;  %v1627_v4 = vmul.f32 0.6931472, %v2347_v0  ;;  %v1652_v2 = vadd.f32 %v1625_v25, %v1524_v58  ;;  %v1464_v26 = vmul.f32 1.442695, %v1436_v1 }
 0x3c9   :  { %v2351_v62 = vpop.eup %2350  ;;  %2370 = vpow2.f32 %v1594_v56  ;;  %v1655_v10 = vadd.f32 %v1631_v34, %v1527_v41  ;;  %v1470_v43 = vmul.f32 1.442695, %v1439_v42  ;;  %v1437_v12 = vsub.f32 0.0, %v3007_v63 }
 0x3ca   :  { %v3160_v7 = vpop.eup %2352  ;;  %2372 = vrsqrt.f32 %v1382_v5  ;;  %v1653_v56 = vadd.f32 %v1627_v4, %v1525_v61  ;;  %v1608_v0 = vadd.f32 1.0, %v2351_v62  ;;  %v1670_v5 = vmul.f32 0.1, %v1654_v44 }
 0x3cb   :  { %v3162_v6 = vpop.eup %2354  ;;  %2374 = vrsqrt.f32 %v1380_v45  ;;  %v1668_v58 = vmul.f32 0.1, %v1652_v2  ;;  %v1153_v41 = vadd.f32 %v2923_v33, %v3038_v46  ;;  %v1671_v1 = vmul.f32 0.1, %v1655_v10 }
 0x3cc   :  { %v2357_v19 = vpop.eup %2356  ;;  %2376 = vrsqrt.f32 %v1383_v14  ;;  %v1145_v62 = vadd.f32 %v3038_v46, %v2925_v8  ;;  %v1156_v42 = vadd.f32 %v2927_v11, %v3038_v46  ;;  %v1669_v45 = vmul.f32 0.1, %v1653_v56 }
 0x3cd   :  { %v2359_v18 = vpop.eup %2358  ;;  %2378 = vrsqrt.f32 %v1381_v37  ;;  %v1611_v29 = vadd.f32 1.0, %v2357_v19  ;;  %v1699_v4 = vsel %vm3081_vm9, %v1670_v5, %v3040_v51  ;;  %v1148_v33 = vadd.f32 %v3038_v46, %v2929_v15 }
 0x3ce   :  { %v2361_v24 = vpop.eup %2360  ;;  %2380 = vlog2.f32 %v1610_v60  ;;  %v1609_v25 = vadd.f32 1.0, %v2359_v18  ;;  %v1466_v60 = vmul.f32 1.442695, %v1437_v12  ;;  %v1697_v8 = vsel %vm3081_vm9, %v1668_v58, %v3040_v51 }
 0x3cf   :  { %v2363_v3 = vpop.eup %2362  ;;  %2382 = vpow2.f32 %v1468_v31  ;;  %v1614_v28 = vadd.f32 1.0, %v2361_v24  ;;  %v1482_v20 = vadd.f32 1.0, %v3147_v48  ;;  %v1700_v31 = vsel %vm3081_vm9, %v1671_v1, %v3040_v51 }
 0x3d0   :  { %v2365_v32 = vpop.eup %2364  ;;  %2384 = vpow2.f32 %v1464_v26  ;;  %v1715_v2 = vsel %vm3092_vm10, %v3106_v47, %v1699_v4  ;;  %v1698_v61 = vsel %vm3081_vm9, %v1669_v45, %v3040_v51  ;;  %v1713_v10 = vsel %vm3092_vm10, %v3133_v9, %v1697_v8 }
 0x3d1   :  { %v2367_v40 = vpop.eup %2366  ;;  %2386 = vpow2.f32 %v1470_v43  ;;  %v1716_v47 = vsel %vm3092_vm10, %v3160_v7, %v1700_v31  ;;  %v1480_v12 = vadd.f32 1.0, %v3156_v16  ;;  %v1531_v45 = vmax.f32 %v2998_v55, 0.0  ;;  %v2065_v55 = vpop.f32.mrb[48].mxu1 }
 0x3d2   :  { %v2369_v34 = vpop.eup %2368  ;;  %2388 = vlog2.f32 %v1608_v0  ;;  %v1612_v11 = vadd.f32 1.0, %v2367_v40  ;;  %v1481_v40 = vadd.f32 1.0, %v2363_v3 }
 0x3d3   :  { %v2371_v54 = vpop.eup %2370  ;;  %2390 = vlog2.f32 %v1611_v29  ;;  %v1615_v37 = vadd.f32 1.0, %v2369_v34  ;;  %v1714_v29 = vsel %vm3092_vm10, %v2365_v32, %v1698_v61 }
 0x3d4   :  { %v2373_v14 = vpop.eup %2372  ;;  %2392 = vlog2.f32 %v1609_v25  ;;  %v1613_v48 = vadd.f32 1.0, %v2371_v54  ;;  %v1483_v25 = vadd.f32 1.0, %v3162_v6  ;;  %v1530_v6 = vmax.f32 %v3001_v57, 0.0 }
 0x3d5   :  { %v2375_v44 = vpop.eup %2374  ;;  %2394 = vlog2.f32 %v1614_v28  ;;  %v1414_v19 = vmul.f32 %v2373_v14, %v1153_v41  ;;  %v1532_v57 = vmax.f32 %v3004_v59, 0.0 }
 0x3d6   :  { %v2377_v15 = vpop.eup %2376  ;;  %v1412_v26 = vmul.f32 %v2375_v44, %v1145_v62  ;;  %2396 = vpow2.f32 %v1466_v60  ;;  %v1534_v60 = vmax.f32 %v2978_v22, 0.0  ;;  %v1169_v22 = vadd.f32 %v2937_v21, %v3038_v46 }
 0x3d7   :  { %v2379_v18 = vpop.eup %2378  ;;  %v1731_v43 = vsel %vm1682_vm11, %v1414_v19, %v1715_v2  ;;  %v1415_v24 = vmul.f32 %v2377_v15, %v1156_v42  ;;  %2398 = vlog2.f32 %v1612_v11  ;;  %v1528_v42 = vmax.f32 %v2988_v13, 0.0 }
 0x3d8   :  { %v2381_v56 = vpop.eup %2380  ;;  %1755 = vst [vmem:[%s3335_s13 + $0x70] sm:$0xff] %v1731_v43  ;;  %v1729_v0 = vsel %vm1682_vm11, %v1412_v26, %v1713_v10  ;;  %v1413_v5 = vmul.f32 %v2379_v18, %v1148_v33  ;;  %2400 = vlog2.f32 %v1615_v37  ;;  %v1529_v33 = vmax.f32 %v2991_v49, 0.0  ;;  %v1361_v49 = vpop.f32.mrb[49].mxu1 }
 0x3d9   :  { %v2383_v9 = vpop.eup %2382  ;;  %1753 = vst [vmem:[%s3335_s13 + $0x60] sm:$0xff] %v1729_v0  ;;  %v1732_v7 = vsel %vm1682_vm11, %v1415_v24, %v1716_v47  ;;  %2402 = vlog2.f32 %v1613_v48  ;;  %v1637_v4 = vmul.f32 0.6931472, %v2381_v56  ;;  %v1390_v26 = vmax.f32 %v2065_v55, 1e-24  ;;  %v2066_v18 = vpop.f32.mrb[50].mxu1 }
 0x3da   :  { %v2385_v58 = vpop.eup %2384  ;;  %1756 = vst [vmem:[%s3335_s13 + $0x78] sm:$0xff] %v1732_v7  ;;  %v1730_v32 = vsel %vm1682_vm11, %v1413_v5, %v1714_v29  ;;  %2404 = vrcp.f32 %v1482_v20  ;;  %v1486_v1 = vadd.f32 1.0, %v2383_v9  ;;  %v2061_v20 = vpop.f32.mrb[40].mxu0  ;;  %v1388_v56 = vmax.f32 %v1361_v49, 1e-24 }
 0x3db   :  { %v2387_v16 = vpop.eup %2386  ;;  %1754 = vst [vmem:[%s3335_s13 + $0x68] sm:$0xff] %v1730_v32  ;;  %2406 = vrcp.f32 %v1480_v12  ;;  %v1484_v34 = vadd.f32 1.0, %v2385_v58  ;;  %v1386_v13 = vmax.f32 %v2061_v20, 1e-24  ;;  %v1345_v31 = vpop.f32.mrb[41].mxu0  ;;  %v1658_v43 = vadd.f32 %v1637_v4, %v1530_v6 }
 0x3dc   :  { %v2389_v41 = vpop.eup %2388  ;;  %2408 = vrcp.f32 %v1483_v25  ;;  %v1487_v54 = vadd.f32 1.0, %v2387_v16  ;;  %v1384_v15 = vmax.f32 %v1345_v31, 1e-24  ;;  %v2062_v2 = vpop.f32.mrb[42].mxu0  ;;  %v1391_v9 = vmax.f32 %v2066_v18, 1e-24 }
 0x3dd   :  { %v2391_v28 = vpop.eup %2390  ;;  %2410 = vrcp.f32 %v1481_v40  ;;  %v1633_v14 = vmul.f32 0.6931472, %v2389_v41  ;;  %v1387_v48 = vmax.f32 %v2062_v2, 1e-24  ;;  %v1348_v59 = vpop.f32.mrb[43].mxu0  ;;  %v1188_v31 = vadd.f32 %v2953_v39, %v3038_v46 }
 0x3de   :  { %v2393_v62 = vpop.eup %2392  ;;  %v1639_v8 = vmul.f32 0.6931472, %v2391_v28  ;;  %2412 = vrcp.f32 %v1486_v1  ;;  %v1385_v24 = vmax.f32 %v1348_v59, 1e-24  ;;  %v1364_v47 = vpop.f32.mrb[51].mxu1  ;;  %v1535_v28 = vmax.f32 %v2981_v35, 0.0 }
 0x3df   :  { %v2395_v3 = vpop.eup %2394  ;;  %v1635_v44 = vmul.f32 0.6931472, %v2393_v62  ;;  %2414 = vrcp.f32 %v1484_v34  ;;  %v1656_v0 = vadd.f32 %v1633_v14, %v1528_v42  ;;  %v1389_v21 = vmax.f32 %v1364_v47, 1e-24 }
 0x3e0   :  { %v2397_v11 = vpop.eup %2396  ;;  %v1645_v19 = vmul.f32 0.6931472, %v2395_v3  ;;  %2416 = vrcp.f32 %v1487_v54  ;;  %v1659_v12 = vadd.f32 %v1639_v8, %v1531_v45  ;;  %v1674_v41 = vmul.f32 0.1, %v1658_v43 }
 0x3e1   :  { %v2399_v37 = vpop.eup %2398  ;;  %2418 = vrsqrt.f32 %v1386_v13  ;;  %v1657_v25 = vadd.f32 %v1635_v44, %v1529_v33  ;;  %v1485_v32 = vadd.f32 1.0, %v2397_v11  ;;  %v1672_v34 = vmul.f32 0.1, %v1656_v0 }
 0x3e2   :  { %v2401_v61 = vpop.eup %2400  ;;  %2420 = vrsqrt.f32 %v1384_v15  ;;  %v1641_v5 = vmul.f32 0.6931472, %v2399_v37  ;;  %v1662_v1 = vadd.f32 %v1645_v19, %v1534_v60  ;;  %v1533_v42 = vmax.f32 %v3007_v63, 0.0 }
 0x3e3   :  { %v2403_v10 = vpop.eup %2402  ;;  %2422 = vrsqrt.f32 %v1387_v48  ;;  %v1647_v7 = vmul.f32 0.6931472, %v2401_v61  ;;  %v1161_v54 = vadd.f32 %v3038_v46, %v2939_v50  ;;  %v1675_v3 = vmul.f32 0.1, %v1659_v12 }
 0x3e4   :  { %v2405_v29 = vpop.eup %2404  ;;  %2424 = vrsqrt.f32 %v1385_v24  ;;  %v1643_v16 = vmul.f32 0.6931472, %v2403_v10  ;;  %v1660_v62 = vadd.f32 %v1641_v5, %v1532_v57  ;;  %v1172_v60 = vadd.f32 %v2945_v27, %v3038_v46 }
 0x3e5   :  { %v2407_v58 = vpop.eup %2406  ;;  %2426 = vrsqrt.f32 %v1390_v26  ;;  %v1663_v4 = vadd.f32 %v1647_v7, %v1535_v28  ;;  %v1673_v14 = vmul.f32 0.1, %v1657_v25  ;;  %v1703_v63 = vsel %vm3081_vm9, %v1674_v41, %v3040_v51 }
 0x3e6   :  { %v2409_v40 = vpop.eup %2408  ;;  %2428 = vrsqrt.f32 %v1388_v56  ;;  %v1661_v35 = vadd.f32 %v1643_v16, %v1533_v42  ;;  %v1164_v57 = vadd.f32 %v3038_v46, %v2947_v53  ;;  %v1678_v20 = vmul.f32 0.1, %v1662_v1 }
 0x3e7   :  { %v2411_v6 = vpop.eup %2410  ;;  %2430 = vrsqrt.f32 %v1391_v9  ;;  %v1185_v50 = vadd.f32 %v2949_v36, %v3038_v46  ;;  %v1701_v27 = vsel %vm3081_vm9, %v1672_v34, %v3040_v51  ;;  %v1676_v44 = vmul.f32 0.1, %v1660_v62 }
 0x3e8   :  { %v2413_v45 = vpop.eup %2412  ;;  %2432 = vrsqrt.f32 %v1389_v21  ;;  %v1177_v13 = vadd.f32 %v3038_v46, %v2951_v38  ;;  %v1704_v53 = vsel %vm3081_vm9, %v1675_v3, %v3040_v51  ;;  %v1679_v37 = vmul.f32 0.1, %v1663_v4 }
 0x3e9   :  { %v2415_v33 = vpop.eup %2414  ;;  %2434 = vrcp.f32 %v1485_v32  ;;  %v1180_v36 = vadd.f32 %v3038_v46, %v2958_v23  ;;  %v1719_v2 = vsel %vm3092_vm10, %v2405_v29, %v1703_v63  ;;  %v1702_v38 = vsel %vm3081_vm9, %v1673_v14, %v3040_v51 }
 0x3ea   :  { %v2417_v8 = vpop.eup %2416  ;;  %v1677_v49 = vmul.f32 0.1, %v1661_v35  ;;  %v1717_v48 = vsel %vm3092_vm10, %v2407_v58, %v1701_v27  ;;  %v1707_v59 = vsel %vm3081_vm9, %v1678_v20, %v3040_v51  ;;  %v1720_v26 = vsel %vm3092_vm10, %v2409_v40, %v1704_v53 }
 0x3eb   :  { %v2419_v11 = vpop.eup %2418  ;;  %v1705_v18 = vsel %vm3081_vm9, %v1676_v44, %v3040_v51  ;;  %v1718_v56 = vsel %vm3092_vm10, %v2411_v6, %v1702_v38  ;;  %v1708_v47 = vsel %vm3081_vm9, %v1679_v37, %v3040_v51  ;;  %v1723_v29 = vsel %vm3092_vm10, %v2413_v45, %v1707_v59 }
 0x3ec   :  { %v2421_v55 = vpop.eup %2420  ;;  %v1418_v19 = vmul.f32 %v2419_v11, %v1169_v22  ;;  %v1706_v12 = vsel %vm3081_vm9, %v1677_v49, %v3040_v51  ;;  %v1721_v25 = vsel %vm3092_vm10, %v2415_v33, %v1705_v18  ;;  %v1724_v16 = vsel %vm3092_vm10, %v2417_v8, %v1708_v47 }
 0x3ed   :  { %v2423_v15 = vpop.eup %2422  ;;  %v1416_v39 = vmul.f32 %v2421_v55, %v1161_v54 }
 0x3ee   :  { %v2425_v61 = vpop.eup %2424  ;;  %v1735_v23 = vsel %vm1682_vm11, %v1418_v19, %v1719_v2  ;;  %v1419_v46 = vmul.f32 %v2423_v15, %v1172_v60 }
 0x3ef   :  { %v2427_v22 = vpop.eup %2426  ;;  %1759 = vst [vmem:[%s3335_s13 + $0x90] sm:$0xff] %v1735_v23  ;;  %v1733_v10 = vsel %vm1682_vm11, %v1416_v39, %v1717_v48  ;;  %v1417_v43 = vmul.f32 %v2425_v61, %v1164_v57 }
 0x3f0   :  { %v2429_v24 = vpop.eup %2428  ;;  %1757 = vst [vmem:[%s3335_s13 + $0x80] sm:$0xff] %v1733_v10  ;;  %v1736_v0 = vsel %vm1682_vm11, %v1419_v46, %v1720_v26  ;;  %v1422_v5 = vmul.f32 %v2427_v22, %v1185_v50 }
 0x3f1   :  { %v2431_v9 = vpop.eup %2430  ;;  %1760 = vst [vmem:[%s3335_s13 + $0x98] sm:$0xff] %v1736_v0  ;;  %v1734_v7 = vsel %vm1682_vm11, %v1417_v43, %v1718_v56  ;;  %v1420_v21 = vmul.f32 %v2429_v24, %v1177_v13 }
 0x3f2   :  { %v2433_v58 = vpop.eup %2432  ;;  %1758 = vst [vmem:[%s3335_s13 + $0x88] sm:$0xff] %v1734_v7  ;;  %v1739_v17 = vsel %vm1682_vm11, %v1422_v5, %v1723_v29  ;;  %v1423_v51 = vmul.f32 %v2431_v9, %v1188_v31 }
 0x3f3   :  { %v2435_v32 = vpop.eup %2434  ;;  %1763 = vst [vmem:[%s3335_s13 + $0xb0] sm:$0xff] %v1739_v17  ;;  %v1737_v40 = vsel %vm1682_vm11, %v1420_v21, %v1721_v25  ;;  %v1421_v41 = vmul.f32 %v2433_v58, %v1180_v36 }
 0x3f4   :  { %v1722_v1 = vsel %vm3092_vm10, %v2435_v32, %v1706_v12  ;;  %1761 = vst [vmem:[%s3335_s13 + $0xa0] sm:$0xff] %v1737_v40  ;;  %v1740_v28 = vsel %vm1682_vm11, %v1423_v51, %v1724_v16 }
 0x3f5   :  { %1764 = vst [vmem:[%s3335_s13 + $0xb8] sm:$0xff] %v1740_v28  ;;  %v1738_v6 = vsel %vm1682_vm11, %v1421_v41, %v1722_v1 }
 0x3f6   :  { %1762 = vst [vmem:[%s3335_s13 + $0xa8] sm:$0xff] %v1738_v6 }

</bundles_post_ra>
